<compile_context>
chip_gen: v5e
topology: v5e:2x2
jax: 0.10.0
libtpu: 0.0.40
codegen_flags: <defaults>
</compile_context>

<pallas_src>
import jax
import jax.numpy as jnp
from jax.experimental import pallas as pl
from jax.experimental.pallas import tpu as pltpu

# --------------------------- mini CLIP config --------------------------------
HIDDEN = 32              # vision hidden_size   (1024 in clip-vit-large-patch14)
HEADS = 4                # attention heads      (16)
HEAD_DIM = HIDDEN // HEADS
LAYERS = 2               # encoder layers       (24)
INTERMEDIATE = 64        # MLP intermediate     (4096)
PROJ_DIM = 16            # projection_dim       (768)
PATCH = 8                # patch size           (14)
IMG = 16                 # image size           (224)
CHANNELS = 3
CPP = CHANNELS * PATCH * PATCH          # im2col row length
N_PATCH = (IMG // PATCH) ** 2
SEQ = N_PATCH + 1                       # CLS + patches
LN_EPS = 1e-5                           # CLIPVisionConfig.layer_norm_eps
ATTN_SCALE = HEAD_DIM ** -0.5


# ------------------------------ kernel helpers --------------------------------
def _ln(x, g, b):
    """LayerNorm over the last dim, f32 statistics (v5e-friendly)."""
    mu = jnp.mean(x, axis=-1, keepdims=True)
    var = jnp.mean(jnp.square(x - mu), axis=-1, keepdims=True)
    return (x - mu) * jax.lax.rsqrt(var + LN_EPS) * g + b


def _bf16(x):
    return x.astype(jnp.bfloat16)


# -------------------- the single fused CLIP forward kernel --------------------
def _clip_fused_kernel(
    px_ref,                              # (1, SEQ, CPP) f32 (row 0 = zero CLS slot)
    patch_w_ref,                         # (CPP, HIDDEN) bf16
    tok_ref,                             # (SEQ, HIDDEN) f32  (pos, row0 += cls)
    pre_g_ref, pre_b_ref,                # (1, HIDDEN) f32
    ln1_g_ref, ln1_b_ref,                # (1, 1, HIDDEN) f32
    qkv_w_ref,                           # (1, 3*HEADS, HIDDEN, HEAD_DIM) bf16
    qkv_b_ref,                           # (1, 3*HEADS, 1, HEAD_DIM) f32
    o_w_ref,                             # (1, HEADS, HEAD_DIM, HIDDEN) bf16
    o_b_ref,                             # (1, 1, HIDDEN) f32
    ln2_g_ref, ln2_b_ref,                # (1, 1, HIDDEN) f32
    fc1_w_ref,                           # (1, HIDDEN, INTERMEDIATE) bf16
    fc1_b_ref,                           # (1, 1, INTERMEDIATE) f32
    fc2_w_ref,                           # (1, INTERMEDIATE, HIDDEN) bf16
    fc2_b_ref,                           # (1, 1, HIDDEN) f32
    post_g_ref, post_b_ref,              # (1, HIDDEN) f32
    proj_w_ref,                          # (HIDDEN, PROJ_DIM) bf16
    feat_ref,                            # out: (1, 1, PROJ_DIM) f32
    h_ref,                               # scratch: VMEM (SEQ, HIDDEN) f32
):
    layer = pl.program_id(1)

    # ---- patch embed + CLS/pos add + pre_layrnorm (first layer step only) ----
    @pl.when(layer == 0)
    def _():
        emb = jnp.dot(_bf16(px_ref[0]), patch_w_ref[...],
                      preferred_element_type=jnp.float32)         # (SEQ, HIDDEN)
        emb = emb + tok_ref[...]                                   # CLS (row 0) + pos
        h_ref[...] = _ln(emb, pre_g_ref[...], pre_b_ref[...])      # pre_layrnorm

    x = h_ref[...]                                                 # (SEQ, HIDDEN) f32

    # ---- self-attention block (pre-LN).  Heads live on a LEADING axis. ----
    xl = _ln(x, ln1_g_ref[0], ln1_b_ref[0])
    xl_b = jnp.broadcast_to(_bf16(xl), (3 * HEADS, SEQ, HIDDEN))   # hoisted, once
    qkv = jnp.einsum("nsk,nkd->nsd", xl_b, qkv_w_ref[0],
                     preferred_element_type=jnp.float32) + qkv_b_ref[0]
    q = qkv[0 * HEADS:1 * HEADS]          # (HEADS, SEQ, HEAD_DIM); scale pre-folded
    k = qkv[1 * HEADS:2 * HEADS]
    v = qkv[2 * HEADS:3 * HEADS]

    s = jnp.einsum("nqd,nkd->nqk", _bf16(q), _bf16(k),
                   preferred_element_type=jnp.float32)             # (HEADS, SEQ, SEQ)
    s = s - jnp.max(s, axis=-1, keepdims=True)
    p = jnp.exp(s)                                                  # f32 (EUP)
    p = p * pl.reciprocal(jnp.sum(p, axis=-1, keepdims=True), approx=True)

    ctx = jnp.einsum("nqk,nkd->nqd", _bf16(p), _bf16(v),
                     preferred_element_type=jnp.float32)            # (HEADS, SEQ, HEAD_DIM)
    attn_h = jnp.einsum("nsd,ndh->nsh", _bf16(ctx), o_w_ref[0],
                        preferred_element_type=jnp.float32)         # (HEADS, SEQ, HIDDEN)
    h1 = x + jnp.sum(attn_h, axis=0) + o_b_ref[0]                   # residual 1

    # ---- MLP block (pre-LN, quick_gelu) ----
    x2 = _ln(h1, ln2_g_ref[0], ln2_b_ref[0])
    m = jnp.dot(_bf16(x2), fc1_w_ref[0],
                preferred_element_type=jnp.float32) + fc1_b_ref[0]
    m = m * jax.nn.sigmoid(1.702 * m)                               # quick_gelu, f32 EUP
    m = jnp.dot(_bf16(m), fc2_w_ref[0],
                preferred_element_type=jnp.float32) + fc2_b_ref[0]
    h_new = h1 + m                                                   # residual 2
    h_ref[...] = h_new

    # ---- CLS pool + post_layernorm + visual_projection (last layer step) ----
    @pl.when(layer == LAYERS - 1)
    def _():
        pooled = _ln(h_new[0:1, :], post_g_ref[...], post_b_ref[...])   # (1, HIDDEN)
        feat_ref[0] = jnp.dot(_bf16(pooled), proj_w_ref[...],
                              preferred_element_type=jnp.float32)


# ---------------------------- pallas_call wrapper -----------------------------
def clip_image_features(x, kp):
    """x: (B, C, IMG, IMG) f32 NCHW -> image features (B, PROJ_DIM) f32."""
    px = _im2col(x)                          # (B, SEQ, CPP), row 0 zeros (CLS slot)
    B = px.shape[0]

    def lspec(shape):                        # per-layer stacked param
        nd = len(shape)
        return pl.BlockSpec((1,) + tuple(shape[1:]),
                            lambda b, l: (l,) + (0,) * (nd - 1))

    def cspec(shape):                        # shared (constant-index) param
        nd = len(shape)
        return pl.BlockSpec(tuple(shape), lambda b, l: (0,) * nd)

    grid_spec = pltpu.PrefetchScalarGridSpec(
        num_scalar_prefetch=0,
        grid=(B, LAYERS),
        in_specs=[
            pl.BlockSpec((1, SEQ, CPP), lambda b, l: (b, 0, 0)),          # px
            cspec((CPP, HIDDEN)),                                          # patch_w
            cspec((SEQ, HIDDEN)),                                          # tok
            cspec((1, HIDDEN)), cspec((1, HIDDEN)),                        # pre_g/b
            lspec((LAYERS, 1, HIDDEN)), lspec((LAYERS, 1, HIDDEN)),        # ln1_g/b
            lspec((LAYERS, 3 * HEADS, HIDDEN, HEAD_DIM)),                  # qkv_w
            lspec((LAYERS, 3 * HEADS, 1, HEAD_DIM)),                       # qkv_b
            lspec((LAYERS, HEADS, HEAD_DIM, HIDDEN)),                      # o_w
            lspec((LAYERS, 1, HIDDEN)),                                    # o_b
            lspec((LAYERS, 1, HIDDEN)), lspec((LAYERS, 1, HIDDEN)),        # ln2_g/b
            lspec((LAYERS, HIDDEN, INTERMEDIATE)),                         # fc1_w
            lspec((LAYERS, 1, INTERMEDIATE)),                              # fc1_b
            lspec((LAYERS, INTERMEDIATE, HIDDEN)),                         # fc2_w
            lspec((LAYERS, 1, HIDDEN)),                                    # fc2_b
            cspec((1, HIDDEN)), cspec((1, HIDDEN)),                        # post_g/b
            cspec((HIDDEN, PROJ_DIM)),                                     # proj_w
        ],
        out_specs=pl.BlockSpec((1, 1, PROJ_DIM), lambda b, l: (b, 0, 0)),
        scratch_shapes=[pltpu.VMEM((SEQ, HIDDEN), jnp.float32)],           # resident h
    )

    feats = pl.pallas_call(
        _clip_fused_kernel,
        out_shape=jax.ShapeDtypeStruct((B, 1, PROJ_DIM), jnp.float32),
        grid_spec=grid_spec,
        compiler_params=pltpu.CompilerParams(
            dimension_semantics=("parallel", "arbitrary"),   # batch || , layers seq
            vmem_limit_bytes=32 * 1024 * 1024,
        ),
    )(px, kp["patch_w"], kp["tok"], kp["pre_g"], kp["pre_b"],
      kp["ln1_g"], kp["ln1_b"], kp["qkv_w"], kp["qkv_b"],
      kp["o_w"], kp["o_b"], kp["ln2_g"], kp["ln2_b"],
      kp["fc1_w"], kp["fc1_b"], kp["fc2_w"], kp["fc2_b"],
      kp["post_g"], kp["post_b"], kp["proj_w"])

    return feats[:, 0, :]


# --------------------------- wrapper glue (XLA) --------------------------------
def _im2col(x):
    """Conv2d(stride=patch, bias=False) as im2col rows; row 0 is a zero slot so
    the CLS embedding enters additively via `tok` inside the kernel."""
    B = x.shape[0]
    nh = IMG // PATCH
    p = x.reshape(B, CHANNELS, nh, PATCH, nh, PATCH)
    p = p.transpose(0, 2, 4, 1, 3, 5).reshape(B, N_PATCH, CPP)
    return jnp.concatenate([jnp.zeros((B, 1, CPP), x.dtype), p], axis=1)


# ------------------------- parameters (synthetic) ------------------------------
def init_params(key):
    """HF-layout f32 params (matmul weights pre-rounded to bf16 values)."""
    kit = iter(jax.random.split(key, 64))

    def w(shape, scale=0.02):
        v = scale * jax.random.normal(next(kit), shape, jnp.float32)
        return v.astype(jnp.bfloat16).astype(jnp.float32)   # bf16-representable

    def b(shape, scale=0.02):
        return scale * jax.random.normal(next(kit), shape, jnp.float32)

    params = dict(
        patch_w=w((CPP, HIDDEN)),                     # Conv2d (flattened), bias=False
        cls_token=b((HIDDEN,)),
        pos_embed=b((SEQ, HIDDEN)),
        pre_g=jnp.ones((HIDDEN,), jnp.float32), pre_b=jnp.zeros((HIDDEN,), jnp.float32),
        post_g=jnp.ones((HIDDEN,), jnp.float32), post_b=jnp.zeros((HIDDEN,), jnp.float32),
        proj_w=w((HIDDEN, PROJ_DIM)),                 # visual_projection (no bias)
        layers=[],
    )
    for _ in range(LAYERS):
        params["layers"].append(dict(
            ln1_g=1.0 + b((HIDDEN,), 0.05), ln1_b=b((HIDDEN,)),
            wq=w((HIDDEN, HIDDEN)), bq=b((HIDDEN,)),
            wk=w((HIDDEN, HIDDEN)), bk=b((HIDDEN,)),
            wv=w((HIDDEN, HIDDEN)), bv=b((HIDDEN,)),
            wo=w((HIDDEN, HIDDEN)), bo=b((HIDDEN,)),
            ln2_g=1.0 + b((HIDDEN,), 0.05), ln2_b=b((HIDDEN,)),
            fc1=w((HIDDEN, INTERMEDIATE)), b1=b((INTERMEDIATE,)),
            fc2=w((INTERMEDIATE, HIDDEN)), b2=b((HIDDEN,)),
        ))
    return params


def pack_params(p):
    """Kernel layout: layer-stacked, head-leading split, bf16 matmul weights,
    ATTN_SCALE folded into the Q weights/bias."""
    def split_cols(wmat):    # (HIDDEN, HIDDEN) -> (HEADS, HIDDEN, HEAD_DIM)
        return wmat.reshape(HIDDEN, HEADS, HEAD_DIM).transpose(1, 0, 2)

    qkv_w, qkv_b, o_w = [], [], []
    for lp in p["layers"]:
        ws = [split_cols(lp["wq"] * ATTN_SCALE), split_cols(lp["wk"]), split_cols(lp["wv"])]
        bs = [(lp["bq"] * ATTN_SCALE).reshape(HEADS, 1, HEAD_DIM),
              lp["bk"].reshape(HEADS, 1, HEAD_DIM),
              lp["bv"].reshape(HEADS, 1, HEAD_DIM)]
        qkv_w.append(jnp.concatenate(ws, axis=0))             # (3*HEADS, HIDDEN, D)
        qkv_b.append(jnp.concatenate(bs, axis=0))             # (3*HEADS, 1, D)
        o_w.append(lp["wo"].reshape(HEADS, HEAD_DIM, HIDDEN)) # head rows of Wo

    def stack_vec(name, width):
        return jnp.stack([lp[name] for lp in p["layers"]]).reshape(LAYERS, 1, width)

    return dict(
        patch_w=p["patch_w"].astype(jnp.bfloat16),
        tok=p["pos_embed"].at[0].add(p["cls_token"]),
        pre_g=p["pre_g"].reshape(1, HIDDEN), pre_b=p["pre_b"].reshape(1, HIDDEN),
        ln1_g=stack_vec("ln1_g", HIDDEN), ln1_b=stack_vec("ln1_b", HIDDEN),
        qkv_w=jnp.stack(qkv_w).astype(jnp.bfloat16),
        qkv_b=jnp.stack(qkv_b),
        o_w=jnp.stack(o_w).astype(jnp.bfloat16),
        o_b=stack_vec("bo", HIDDEN),
        ln2_g=stack_vec("ln2_g", HIDDEN), ln2_b=stack_vec("ln2_b", HIDDEN),
        fc1_w=jnp.stack([lp["fc1"] for lp in p["layers"]]).astype(jnp.bfloat16),
        fc1_b=stack_vec("b1", INTERMEDIATE),
        fc2_w=jnp.stack([lp["fc2"] for lp in p["layers"]]).astype(jnp.bfloat16),
        fc2_b=stack_vec("b2", HIDDEN),
        post_g=p["post_g"].reshape(1, HIDDEN), post_b=p["post_b"].reshape(1, HIDDEN),
        proj_w=p["proj_w"].astype(jnp.bfloat16),
    )


# --------------------------- pure-JAX f32 reference ----------------------------
def _ln_ref(x, g, b):
    mu = x.mean(-1, keepdims=True)
    var = ((x - mu) ** 2).mean(-1, keepdims=True)
    return (x - mu) * jax.lax.rsqrt(var + LN_EPS) * g + b


def clip_ref(x, p):
    patches = _im2col(x)
    tok = p["pos_embed"].at[0].add(p["cls_token"])
    h = _ln_ref(patches @ p["patch_w"] + tok, p["pre_g"], p["pre_b"])
    B = h.shape[0]
    for lp in p["layers"]:
        xl = _ln_ref(h, lp["ln1_g"], lp["ln1_b"])
        q = (xl @ lp["wq"] + lp["bq"]) * ATTN_SCALE
        k = xl @ lp["wk"] + lp["bk"]
        v = xl @ lp["wv"] + lp["bv"]
        qh = q.reshape(B, SEQ, HEADS, HEAD_DIM).transpose(0, 2, 1, 3)
        kh = k.reshape(B, SEQ, HEADS, HEAD_DIM).transpose(0, 2, 1, 3)
        vh = v.reshape(B, SEQ, HEADS, HEAD_DIM).transpose(0, 2, 1, 3)
        s = jnp.einsum("bhqd,bhkd->bhqk", qh, kh)
        prob = jax.nn.softmax(s, axis=-1)
        ctx = jnp.einsum("bhqk,bhkd->bhqd", prob, vh)
        ctx = ctx.transpose(0, 2, 1, 3).reshape(B, SEQ, HIDDEN)
        h = h + ctx @ lp["wo"] + lp["bo"]
        x2 = _ln_ref(h, lp["ln2_g"], lp["ln2_b"])
        m = x2 @ lp["fc1"] + lp["b1"]
        m = m * jax.nn.sigmoid(1.702 * m)
        h = h + m @ lp["fc2"] + lp["b2"]
    pooled = _ln_ref(h[:, 0, :], p["post_g"], p["post_b"])
    return pooled @ p["proj_w"]


# ----------------------------------- main ---------------------------------------
if __name__ == "__main__":
    key = jax.random.PRNGKey(0)
    pkey, xkey = jax.random.split(key)

    params = init_params(pkey)
    kparams = pack_params(params)
    x = jax.random.normal(xkey, (2, CHANNELS, IMG, IMG), dtype=jnp.float32)

    feats = jax.jit(clip_image_features)(x, kparams)
    feats = jax.block_until_ready(feats)

    assert feats.shape == (2, PROJ_DIM), feats.shape
    assert bool(jnp.all(jnp.isfinite(feats)))

    # Tolerance check vs. pure-JAX f32 reference (bf16 matmuls + approx
    # reciprocal in the softmax denominator introduce small differences).
    ref = clip_ref(x, params)
    err = float(jnp.max(jnp.abs(feats - ref)))
    assert err < 2e-2, f"kernel vs reference max abs err = {err}"

    print("KERNEL_OK")
</pallas_src>

<mosaic_0001>
module attributes {stable_mosaic.version = 11 : i64} {
  func.func @_clip_fused_kernel(%arg0: i32, %arg1: i32, %arg2: memref<1x5x192xf32, #tpu.memory_space<vmem>>, %arg3: memref<192x32xbf16, #tpu.memory_space<vmem>>, %arg4: memref<5x32xf32, #tpu.memory_space<vmem>>, %arg5: memref<1x32xf32, #tpu.memory_space<vmem>>, %arg6: memref<1x32xf32, #tpu.memory_space<vmem>>, %arg7: memref<1x1x32xf32, #tpu.memory_space<vmem>>, %arg8: memref<1x1x32xf32, #tpu.memory_space<vmem>>, %arg9: memref<1x12x32x8xbf16, #tpu.memory_space<vmem>>, %arg10: memref<1x12x1x8xf32, #tpu.memory_space<vmem>>, %arg11: memref<1x4x8x32xbf16, #tpu.memory_space<vmem>>, %arg12: memref<1x1x32xf32, #tpu.memory_space<vmem>>, %arg13: memref<1x1x32xf32, #tpu.memory_space<vmem>>, %arg14: memref<1x1x32xf32, #tpu.memory_space<vmem>>, %arg15: memref<1x32x64xbf16, #tpu.memory_space<vmem>>, %arg16: memref<1x1x64xf32, #tpu.memory_space<vmem>>, %arg17: memref<1x64x32xbf16, #tpu.memory_space<vmem>>, %arg18: memref<1x1x32xf32, #tpu.memory_space<vmem>>, %arg19: memref<1x32xf32, #tpu.memory_space<vmem>>, %arg20: memref<1x32xf32, #tpu.memory_space<vmem>>, %arg21: memref<32x16xbf16, #tpu.memory_space<vmem>>, %arg22: memref<1x1x16xf32, #tpu.memory_space<vmem>>, %arg23: memref<5x32xf32, #tpu.memory_space<vmem>>) attributes {dimension_semantics = [#tpu.dimension_semantics<parallel>, #tpu.dimension_semantics<arbitrary>], iteration_bounds = array<i64: 2, 2>, scalar_prefetch = 0 : i64, scratch_operands = 1 : i64, tpu.core_type = #tpu.core_type<tc>, window_params = [{transform_indices = @transform_0, window_bounds = array<i64: 1, 5, 192>}, {pipeline_mode = #tpu.pipeline_mode<synchronous>, transform_indices = @transform_1, window_bounds = array<i64: 192, 32>}, {pipeline_mode = #tpu.pipeline_mode<synchronous>, transform_indices = @transform_2, window_bounds = array<i64: 5, 32>}, {pipeline_mode = #tpu.pipeline_mode<synchronous>, transform_indices = @transform_3, window_bounds = array<i64: 1, 32>}, {pipeline_mode = #tpu.pipeline_mode<synchronous>, transform_indices = @transform_4, window_bounds = array<i64: 1, 32>}, {transform_indices = @transform_5, window_bounds = array<i64: 1, 1, 32>}, {transform_indices = @transform_6, window_bounds = array<i64: 1, 1, 32>}, {transform_indices = @transform_7, window_bounds = array<i64: 1, 12, 32, 8>}, {transform_indices = @transform_8, window_bounds = array<i64: 1, 12, 1, 8>}, {transform_indices = @transform_9, window_bounds = array<i64: 1, 4, 8, 32>}, {transform_indices = @transform_10, window_bounds = array<i64: 1, 1, 32>}, {transform_indices = @transform_11, window_bounds = array<i64: 1, 1, 32>}, {transform_indices = @transform_12, window_bounds = array<i64: 1, 1, 32>}, {transform_indices = @transform_13, window_bounds = array<i64: 1, 32, 64>}, {transform_indices = @transform_14, window_bounds = array<i64: 1, 1, 64>}, {transform_indices = @transform_15, window_bounds = array<i64: 1, 64, 32>}, {transform_indices = @transform_16, window_bounds = array<i64: 1, 1, 32>}, {pipeline_mode = #tpu.pipeline_mode<synchronous>, transform_indices = @transform_17, window_bounds = array<i64: 1, 32>}, {pipeline_mode = #tpu.pipeline_mode<synchronous>, transform_indices = @transform_18, window_bounds = array<i64: 1, 32>}, {pipeline_mode = #tpu.pipeline_mode<synchronous>, transform_indices = @transform_19, window_bounds = array<i64: 32, 16>}, {transform_indices = @transform_20, window_bounds = array<i64: 1, 1, 16>}]} {
    %c0_i32 = arith.constant 0 : i32
    %0 = arith.cmpi eq, %arg1, %c0_i32 : i32
    %1 = arith.extui %0 : i1 to i32
    %c0_i32_0 = arith.constant 0 : i32
    %2 = arith.cmpi ne, %1, %c0_i32_0 : i32
    scf.if %2 {
      %c0_64 = arith.constant 0 : index
      %c0_65 = arith.constant 0 : index
      %c0_66 = arith.constant 0 : index
      %124 = vector.load %arg2[%c0_64, %c0_65, %c0_66] : memref<1x5x192xf32, #tpu.memory_space<vmem>>, vector<1x5x192xf32>
      %125 = vector.shape_cast %124 : vector<1x5x192xf32> to vector<5x192xf32>
      %126 = arith.truncf %125 : vector<5x192xf32> to vector<5x192xbf16>
      %c0_67 = arith.constant 0 : index
      %c0_68 = arith.constant 0 : index
      %127 = vector.load %arg3[%c0_67, %c0_68] : memref<192x32xbf16, #tpu.memory_space<vmem>>, vector<192x32xbf16>
      %cst_69 = arith.constant dense<0.000000e+00> : vector<5x32xf32>
      %128 = tpu.matmul %126, %127, %cst_69 {dimension_numbers = #tpu.dot_dimension_numbers<[1], [0], [0], [1], [0, 0, 1, 1], [], []>} : vector<5x192xbf16>, vector<192x32xbf16>, vector<5x32xf32> -> vector<5x32xf32>
      %c0_70 = arith.constant 0 : index
      %c0_71 = arith.constant 0 : index
      %129 = vector.load %arg4[%c0_70, %c0_71] : memref<5x32xf32, #tpu.memory_space<vmem>>, vector<5x32xf32>
      %130 = arith.addf %128, %129 : vector<5x32xf32>
      %c0_72 = arith.constant 0 : index
      %c0_73 = arith.constant 0 : index
      %131 = vector.load %arg5[%c0_72, %c0_73] : memref<1x32xf32, #tpu.memory_space<vmem>>, vector<1x32xf32>
      %c0_74 = arith.constant 0 : index
      %c0_75 = arith.constant 0 : index
      %132 = vector.load %arg6[%c0_74, %c0_75] : memref<1x32xf32, #tpu.memory_space<vmem>>, vector<1x32xf32>
      %cst_76 = arith.constant dense<0.000000e+00> : vector<5xf32>
      %133 = vector.multi_reduction <add>, %130, %cst_76 [1] : vector<5x32xf32> to vector<5xf32>
      %134 = vector.shape_cast %133 : vector<5xf32> to vector<5x1xf32>
      %cst_77 = arith.constant 3.200000e+01 : f32
      %135 = vector.broadcast %cst_77 : f32 to vector<5x1xf32>
      %136 = arith.divf %134, %135 : vector<5x1xf32>
      %137 = vector.broadcast %136 : vector<5x1xf32> to vector<5x32xf32>
      %138 = arith.subf %130, %137 : vector<5x32xf32>
      %139 = arith.mulf %138, %138 : vector<5x32xf32>
      %cst_78 = arith.constant dense<0.000000e+00> : vector<5xf32>
      %140 = vector.multi_reduction <add>, %139, %cst_78 [1] : vector<5x32xf32> to vector<5xf32>
      %141 = vector.shape_cast %140 : vector<5xf32> to vector<5x1xf32>
      %cst_79 = arith.constant 3.200000e+01 : f32
      %142 = vector.broadcast %cst_79 : f32 to vector<5x1xf32>
      %143 = arith.divf %141, %142 : vector<5x1xf32>
      %144 = vector.broadcast %136 : vector<5x1xf32> to vector<5x32xf32>
      %145 = arith.subf %130, %144 : vector<5x32xf32>
      %cst_80 = arith.constant 9.99999974E-6 : f32
      %146 = vector.broadcast %cst_80 : f32 to vector<5x1xf32>
      %147 = arith.addf %143, %146 : vector<5x1xf32>
      %148 = math.rsqrt %147 : vector<5x1xf32>
      %149 = vector.broadcast %148 : vector<5x1xf32> to vector<5x32xf32>
      %150 = arith.mulf %145, %149 : vector<5x32xf32>
      %151 = vector.broadcast %131 : vector<1x32xf32> to vector<5x32xf32>
      %152 = arith.mulf %150, %151 : vector<5x32xf32>
      %153 = vector.broadcast %132 : vector<1x32xf32> to vector<5x32xf32>
      %154 = arith.addf %152, %153 : vector<5x32xf32>
      %c0_81 = arith.constant 0 : index
      %c0_82 = arith.constant 0 : index
      %155 = vector.load %arg23[%c0_81, %c0_82] : memref<5x32xf32, #tpu.memory_space<vmem>>, vector<5x32xf32>
      tpu.vector_store %arg23[%c0_81, %c0_82], %154 {strides = array<i32>} : memref<5x32xf32, #tpu.memory_space<vmem>>, vector<5x32xf32>,
    } else {
    }
    %c0 = arith.constant 0 : index
    %c0_1 = arith.constant 0 : index
    %3 = vector.load %arg23[%c0, %c0_1] : memref<5x32xf32, #tpu.memory_space<vmem>>, vector<5x32xf32>
    %c0_2 = arith.constant 0 : index
    %c0_3 = arith.constant 0 : index
    %c0_4 = arith.constant 0 : index
    %4 = vector.load %arg7[%c0_2, %c0_3, %c0_4] : memref<1x1x32xf32, #tpu.memory_space<vmem>>, vector<1x1x32xf32>
    %5 = vector.shape_cast %4 : vector<1x1x32xf32> to vector<1x32xf32>
    %c0_5 = arith.constant 0 : index
    %c0_6 = arith.constant 0 : index
    %c0_7 = arith.constant 0 : index
    %6 = vector.load %arg8[%c0_5, %c0_6, %c0_7] : memref<1x1x32xf32, #tpu.memory_space<vmem>>, vector<1x1x32xf32>
    %7 = vector.shape_cast %6 : vector<1x1x32xf32> to vector<1x32xf32>
    %cst = arith.constant dense<0.000000e+00> : vector<5xf32>
    %8 = vector.multi_reduction <add>, %3, %cst [1] : vector<5x32xf32> to vector<5xf32>
    %9 = vector.shape_cast %8 : vector<5xf32> to vector<5x1xf32>
    %cst_8 = arith.constant 3.200000e+01 : f32
    %10 = vector.broadcast %cst_8 : f32 to vector<5x1xf32>
    %11 = arith.divf %9, %10 : vector<5x1xf32>
    %12 = vector.broadcast %11 : vector<5x1xf32> to vector<5x32xf32>
    %13 = arith.subf %3, %12 : vector<5x32xf32>
    %14 = arith.mulf %13, %13 : vector<5x32xf32>
    %cst_9 = arith.constant dense<0.000000e+00> : vector<5xf32>
    %15 = vector.multi_reduction <add>, %14, %cst_9 [1] : vector<5x32xf32> to vector<5xf32>
    %16 = vector.shape_cast %15 : vector<5xf32> to vector<5x1xf32>
    %cst_10 = arith.constant 3.200000e+01 : f32
    %17 = vector.broadcast %cst_10 : f32 to vector<5x1xf32>
    %18 = arith.divf %16, %17 : vector<5x1xf32>
    %19 = vector.broadcast %11 : vector<5x1xf32> to vector<5x32xf32>
    %20 = arith.subf %3, %19 : vector<5x32xf32>
    %cst_11 = arith.constant 9.99999974E-6 : f32
    %21 = vector.broadcast %cst_11 : f32 to vector<5x1xf32>
    %22 = arith.addf %18, %21 : vector<5x1xf32>
    %23 = math.rsqrt %22 : vector<5x1xf32>
    %24 = vector.broadcast %23 : vector<5x1xf32> to vector<5x32xf32>
    %25 = arith.mulf %20, %24 : vector<5x32xf32>
    %26 = vector.broadcast %5 : vector<1x32xf32> to vector<5x32xf32>
    %27 = arith.mulf %25, %26 : vector<5x32xf32>
    %28 = vector.broadcast %7 : vector<1x32xf32> to vector<5x32xf32>
    %29 = arith.addf %27, %28 : vector<5x32xf32>
    %30 = arith.truncf %29 : vector<5x32xf32> to vector<5x32xbf16>
    %31 = vector.shape_cast %30 : vector<5x32xbf16> to vector<1x5x32xbf16>
    %32 = vector.broadcast %31 : vector<1x5x32xbf16> to vector<12x5x32xbf16>
    %c0_12 = arith.constant 0 : index
    %c0_13 = arith.constant 0 : index
    %c0_14 = arith.constant 0 : index
    %c0_15 = arith.constant 0 : index
    %33 = vector.load %arg9[%c0_12, %c0_13, %c0_14, %c0_15] : memref<1x12x32x8xbf16, #tpu.memory_space<vmem>>, vector<1x12x32x8xbf16>
    %34 = vector.shape_cast %33 : vector<1x12x32x8xbf16> to vector<12x32x8xbf16>
    "tpu.trace_start"() <{level = 10 : i32, message = "nsk,nkd->nsd"}> : () -> ()
    %cst_16 = arith.constant dense<0.000000e+00> : vector<12x5x8xf32>
    %35 = tpu.matmul %32, %34, %cst_16 {dimension_numbers = #tpu.dot_dimension_numbers<[2], [1], [1], [2], [0, 0, 0, 1, 1, 2], [0], [0]>} : vector<12x5x32xbf16>, vector<12x32x8xbf16>, vector<12x5x8xf32> -> vector<12x5x8xf32>
    "tpu.trace_stop"() : () -> ()
    %c0_17 = arith.constant 0 : index
    %c0_18 = arith.constant 0 : index
    %c0_19 = arith.constant 0 : index
    %c0_20 = arith.constant 0 : index
    %36 = vector.load %arg10[%c0_17, %c0_18, %c0_19, %c0_20] : memref<1x12x1x8xf32, #tpu.memory_space<vmem>>, vector<1x12x1x8xf32>
    %37 = vector.shape_cast %36 : vector<1x12x1x8xf32> to vector<12x1x8xf32>
    %38 = vector.broadcast %37 : vector<12x1x8xf32> to vector<12x5x8xf32>
    %39 = arith.addf %35, %38 : vector<12x5x8xf32>
    %40 = vector.extract_strided_slice %39 {offsets = [0, 0, 0], sizes = [4, 5, 8], strides = [1, 1, 1]} : vector<12x5x8xf32> to vector<4x5x8xf32>
    %41 = vector.extract_strided_slice %39 {offsets = [4, 0, 0], sizes = [4, 5, 8], strides = [1, 1, 1]} : vector<12x5x8xf32> to vector<4x5x8xf32>
    %42 = vector.extract_strided_slice %39 {offsets = [8, 0, 0], sizes = [4, 5, 8], strides = [1, 1, 1]} : vector<12x5x8xf32> to vector<4x5x8xf32>
    %43 = arith.truncf %40 : vector<4x5x8xf32> to vector<4x5x8xbf16>
    %44 = arith.truncf %41 : vector<4x5x8xf32> to vector<4x5x8xbf16>
    "tpu.trace_start"() <{level = 10 : i32, message = "nqd,nkd->nqk"}> : () -> ()
    %cst_21 = arith.constant dense<0.000000e+00> : vector<4x5x5xf32>
    %45 = tpu.matmul %43, %44, %cst_21 {dimension_numbers = #tpu.dot_dimension_numbers<[2], [2], [1], [1], [0, 0, 0, 1, 1, 1], [0], [0]>} : vector<4x5x8xbf16>, vector<4x5x8xbf16>, vector<4x5x5xf32> -> vector<4x5x5xf32>
    "tpu.trace_stop"() : () -> ()
    %cst_22 = arith.constant dense<0xFF800000> : vector<4x5xf32>
    %46 = vector.multi_reduction <maximumf>, %45, %cst_22 [2] : vector<4x5x5xf32> to vector<4x5xf32>
    %47 = vector.shape_cast %46 : vector<4x5xf32> to vector<4x5x1xf32>
    %48 = vector.broadcast %47 : vector<4x5x1xf32> to vector<4x5x5xf32>
    %49 = arith.subf %45, %48 : vector<4x5x5xf32>
    %50 = math.exp %49 : vector<4x5x5xf32>
    %cst_23 = arith.constant dense<0.000000e+00> : vector<4x5xf32>
    %51 = vector.multi_reduction <add>, %50, %cst_23 [2] : vector<4x5x5xf32> to vector<4x5xf32>
    %52 = vector.shape_cast %51 : vector<4x5xf32> to vector<4x5x1xf32>
    %53 = tpu.reciprocal %52 {approx = true} : vector<4x5x1xf32> -> vector<4x5x1xf32>
    %54 = vector.broadcast %53 : vector<4x5x1xf32> to vector<4x5x5xf32>
    %55 = arith.mulf %50, %54 : vector<4x5x5xf32>
    %56 = arith.truncf %55 : vector<4x5x5xf32> to vector<4x5x5xbf16>
    %57 = arith.truncf %42 : vector<4x5x8xf32> to vector<4x5x8xbf16>
    "tpu.trace_start"() <{level = 10 : i32, message = "nqk,nkd->nqd"}> : () -> ()
    %cst_24 = arith.constant dense<0.000000e+00> : vector<4x5x8xf32>
    %58 = tpu.matmul %56, %57, %cst_24 {dimension_numbers = #tpu.dot_dimension_numbers<[2], [1], [1], [2], [0, 0, 0, 1, 1, 2], [0], [0]>} : vector<4x5x5xbf16>, vector<4x5x8xbf16>, vector<4x5x8xf32> -> vector<4x5x8xf32>
    "tpu.trace_stop"() : () -> ()
    %59 = arith.truncf %58 : vector<4x5x8xf32> to vector<4x5x8xbf16>
    %c0_25 = arith.constant 0 : index
    %c0_26 = arith.constant 0 : index
    %c0_27 = arith.constant 0 : index
    %c0_28 = arith.constant 0 : index
    %60 = vector.load %arg11[%c0_25, %c0_26, %c0_27, %c0_28] : memref<1x4x8x32xbf16, #tpu.memory_space<vmem>>, vector<1x4x8x32xbf16>
    %61 = vector.shape_cast %60 : vector<1x4x8x32xbf16> to vector<4x8x32xbf16>
    "tpu.trace_start"() <{level = 10 : i32, message = "nsd,ndh->nsh"}> : () -> ()
    %cst_29 = arith.constant dense<0.000000e+00> : vector<4x5x32xf32>
    %62 = tpu.matmul %59, %61, %cst_29 {dimension_numbers = #tpu.dot_dimension_numbers<[2], [1], [1], [2], [0, 0, 0, 1, 1, 2], [0], [0]>} : vector<4x5x8xbf16>, vector<4x8x32xbf16>, vector<4x5x32xf32> -> vector<4x5x32xf32>
    "tpu.trace_stop"() : () -> ()
    %cst_30 = arith.constant dense<0.000000e+00> : vector<5x32xf32>
    %63 = vector.multi_reduction <add>, %62, %cst_30 [0] : vector<4x5x32xf32> to vector<5x32xf32>
    %64 = arith.addf %3, %63 : vector<5x32xf32>
    %c0_31 = arith.constant 0 : index
    %c0_32 = arith.constant 0 : index
    %c0_33 = arith.constant 0 : index
    %65 = vector.load %arg12[%c0_31, %c0_32, %c0_33] : memref<1x1x32xf32, #tpu.memory_space<vmem>>, vector<1x1x32xf32>
    %66 = vector.shape_cast %65 : vector<1x1x32xf32> to vector<1x32xf32>
    %67 = vector.broadcast %66 : vector<1x32xf32> to vector<5x32xf32>
    %68 = arith.addf %64, %67 : vector<5x32xf32>
    %c0_34 = arith.constant 0 : index
    %c0_35 = arith.constant 0 : index
    %c0_36 = arith.constant 0 : index
    %69 = vector.load %arg13[%c0_34, %c0_35, %c0_36] : memref<1x1x32xf32, #tpu.memory_space<vmem>>, vector<1x1x32xf32>
    %70 = vector.shape_cast %69 : vector<1x1x32xf32> to vector<1x32xf32>
    %c0_37 = arith.constant 0 : index
    %c0_38 = arith.constant 0 : index
    %c0_39 = arith.constant 0 : index
    %71 = vector.load %arg14[%c0_37, %c0_38, %c0_39] : memref<1x1x32xf32, #tpu.memory_space<vmem>>, vector<1x1x32xf32>
    %72 = vector.shape_cast %71 : vector<1x1x32xf32> to vector<1x32xf32>
    %cst_40 = arith.constant dense<0.000000e+00> : vector<5xf32>
    %73 = vector.multi_reduction <add>, %68, %cst_40 [1] : vector<5x32xf32> to vector<5xf32>
    %74 = vector.shape_cast %73 : vector<5xf32> to vector<5x1xf32>
    %cst_41 = arith.constant 3.200000e+01 : f32
    %75 = vector.broadcast %cst_41 : f32 to vector<5x1xf32>
    %76 = arith.divf %74, %75 : vector<5x1xf32>
    %77 = vector.broadcast %76 : vector<5x1xf32> to vector<5x32xf32>
    %78 = arith.subf %68, %77 : vector<5x32xf32>
    %79 = arith.mulf %78, %78 : vector<5x32xf32>
    %cst_42 = arith.constant dense<0.000000e+00> : vector<5xf32>
    %80 = vector.multi_reduction <add>, %79, %cst_42 [1] : vector<5x32xf32> to vector<5xf32>
    %81 = vector.shape_cast %80 : vector<5xf32> to vector<5x1xf32>
    %cst_43 = arith.constant 3.200000e+01 : f32
    %82 = vector.broadcast %cst_43 : f32 to vector<5x1xf32>
    %83 = arith.divf %81, %82 : vector<5x1xf32>
    %84 = vector.broadcast %76 : vector<5x1xf32> to vector<5x32xf32>
    %85 = arith.subf %68, %84 : vector<5x32xf32>
    %cst_44 = arith.constant 9.99999974E-6 : f32
    %86 = vector.broadcast %cst_44 : f32 to vector<5x1xf32>
    %87 = arith.addf %83, %86 : vector<5x1xf32>
    %88 = math.rsqrt %87 : vector<5x1xf32>
    %89 = vector.broadcast %88 : vector<5x1xf32> to vector<5x32xf32>
    %90 = arith.mulf %85, %89 : vector<5x32xf32>
    %91 = vector.broadcast %70 : vector<1x32xf32> to vector<5x32xf32>
    %92 = arith.mulf %90, %91 : vector<5x32xf32>
    %93 = vector.broadcast %72 : vector<1x32xf32> to vector<5x32xf32>
    %94 = arith.addf %92, %93 : vector<5x32xf32>
    %95 = arith.truncf %94 : vector<5x32xf32> to vector<5x32xbf16>
    %c0_45 = arith.constant 0 : index
    %c0_46 = arith.constant 0 : index
    %c0_47 = arith.constant 0 : index
    %96 = vector.load %arg15[%c0_45, %c0_46, %c0_47] : memref<1x32x64xbf16, #tpu.memory_space<vmem>>, vector<1x32x64xbf16>
    %97 = vector.shape_cast %96 : vector<1x32x64xbf16> to vector<32x64xbf16>
    %cst_48 = arith.constant dense<0.000000e+00> : vector<5x64xf32>
    %98 = tpu.matmul %95, %97, %cst_48 {dimension_numbers = #tpu.dot_dimension_numbers<[1], [0], [0], [1], [0, 0, 1, 1], [], []>} : vector<5x32xbf16>, vector<32x64xbf16>, vector<5x64xf32> -> vector<5x64xf32>
    %c0_49 = arith.constant 0 : index
    %c0_50 = arith.constant 0 : index
    %c0_51 = arith.constant 0 : index
    %99 = vector.load %arg16[%c0_49, %c0_50, %c0_51] : memref<1x1x64xf32, #tpu.memory_space<vmem>>, vector<1x1x64xf32>
    %100 = vector.shape_cast %99 : vector<1x1x64xf32> to vector<1x64xf32>
    %101 = vector.broadcast %100 : vector<1x64xf32> to vector<5x64xf32>
    %102 = arith.addf %98, %101 : vector<5x64xf32>
    %cst_52 = arith.constant 1.702000e+00 : f32
    %103 = vector.broadcast %cst_52 : f32 to vector<5x64xf32>
    %104 = arith.mulf %103, %102 : vector<5x64xf32>
    %105 = arith.negf %104 : vector<5x64xf32>
    %106 = math.exp %105 : vector<5x64xf32>
    %cst_53 = arith.constant 1.000000e+00 : f32
    %107 = vector.broadcast %cst_53 : f32 to vector<5x64xf32>
    %108 = arith.addf %107, %106 : vector<5x64xf32>
    %109 = arith.divf %107, %108 : vector<5x64xf32>
    %110 = arith.mulf %102, %109 : vector<5x64xf32>
    %111 = arith.truncf %110 : vector<5x64xf32> to vector<5x64xbf16>
    %c0_54 = arith.constant 0 : index
    %c0_55 = arith.constant 0 : index
    %c0_56 = arith.constant 0 : index
    %112 = vector.load %arg17[%c0_54, %c0_55, %c0_56] : memref<1x64x32xbf16, #tpu.memory_space<vmem>>, vector<1x64x32xbf16>
    %113 = vector.shape_cast %112 : vector<1x64x32xbf16> to vector<64x32xbf16>
    %cst_57 = arith.constant dense<0.000000e+00> : vector<5x32xf32>
    %114 = tpu.matmul %111, %113, %cst_57 {dimension_numbers = #tpu.dot_dimension_numbers<[1], [0], [0], [1], [0, 0, 1, 1], [], []>} : vector<5x64xbf16>, vector<64x32xbf16>, vector<5x32xf32> -> vector<5x32xf32>
    %c0_58 = arith.constant 0 : index
    %c0_59 = arith.constant 0 : index
    %c0_60 = arith.constant 0 : index
    %115 = vector.load %arg18[%c0_58, %c0_59, %c0_60] : memref<1x1x32xf32, #tpu.memory_space<vmem>>, vector<1x1x32xf32>
    %116 = vector.shape_cast %115 : vector<1x1x32xf32> to vector<1x32xf32>
    %117 = vector.broadcast %116 : vector<1x32xf32> to vector<5x32xf32>
    %118 = arith.addf %114, %117 : vector<5x32xf32>
    %119 = arith.addf %68, %118 : vector<5x32xf32>
    %c0_61 = arith.constant 0 : index
    %c0_62 = arith.constant 0 : index
    %120 = vector.load %arg23[%c0_61, %c0_62] : memref<5x32xf32, #tpu.memory_space<vmem>>, vector<5x32xf32>
    tpu.vector_store %arg23[%c0_61, %c0_62], %119 {strides = array<i32>} : memref<5x32xf32, #tpu.memory_space<vmem>>, vector<5x32xf32>,
    %c1_i32 = arith.constant 1 : i32
    %121 = arith.cmpi eq, %arg1, %c1_i32 : i32
    %122 = arith.extui %121 : i1 to i32
    %c0_i32_63 = arith.constant 0 : i32
    %123 = arith.cmpi ne, %122, %c0_i32_63 : i32
    scf.if %123 {
      %124 = vector.extract_strided_slice %119 {offsets = [0, 0], sizes = [1, 32], strides = [1, 1]} : vector<5x32xf32> to vector<1x32xf32>
      %c0_64 = arith.constant 0 : index
      %c0_65 = arith.constant 0 : index
      %125 = vector.load %arg19[%c0_64, %c0_65] : memref<1x32xf32, #tpu.memory_space<vmem>>, vector<1x32xf32>
      %c0_66 = arith.constant 0 : index
      %c0_67 = arith.constant 0 : index
      %126 = vector.load %arg20[%c0_66, %c0_67] : memref<1x32xf32, #tpu.memory_space<vmem>>, vector<1x32xf32>
      %cst_68 = arith.constant dense<0.000000e+00> : vector<1xf32>
      %127 = vector.multi_reduction <add>, %124, %cst_68 [1] : vector<1x32xf32> to vector<1xf32>
      %128 = vector.shape_cast %127 : vector<1xf32> to vector<1x1xf32>
      %cst_69 = arith.constant 3.200000e+01 : f32
      %129 = vector.broadcast %cst_69 : f32 to vector<1x1xf32>
      %130 = arith.divf %128, %129 : vector<1x1xf32>
      %131 = vector.broadcast %130 : vector<1x1xf32> to vector<1x32xf32>
      %132 = arith.subf %124, %131 : vector<1x32xf32>
      %133 = arith.mulf %132, %132 : vector<1x32xf32>
      %cst_70 = arith.constant dense<0.000000e+00> : vector<1xf32>
      %134 = vector.multi_reduction <add>, %133, %cst_70 [1] : vector<1x32xf32> to vector<1xf32>
      %135 = vector.shape_cast %134 : vector<1xf32> to vector<1x1xf32>
      %cst_71 = arith.constant 3.200000e+01 : f32
      %136 = vector.broadcast %cst_71 : f32 to vector<1x1xf32>
      %137 = arith.divf %135, %136 : vector<1x1xf32>
      %138 = vector.broadcast %130 : vector<1x1xf32> to vector<1x32xf32>
      %139 = arith.subf %124, %138 : vector<1x32xf32>
      %cst_72 = arith.constant 9.99999974E-6 : f32
      %140 = vector.broadcast %cst_72 : f32 to vector<1x1xf32>
      %141 = arith.addf %137, %140 : vector<1x1xf32>
      %142 = math.rsqrt %141 : vector<1x1xf32>
      %143 = vector.broadcast %142 : vector<1x1xf32> to vector<1x32xf32>
      %144 = arith.mulf %139, %143 : vector<1x32xf32>
      %145 = arith.mulf %144, %125 : vector<1x32xf32>
      %146 = arith.addf %145, %126 : vector<1x32xf32>
      %147 = arith.truncf %146 : vector<1x32xf32> to vector<1x32xbf16>
      %c0_73 = arith.constant 0 : index
      %c0_74 = arith.constant 0 : index
      %148 = vector.load %arg21[%c0_73, %c0_74] : memref<32x16xbf16, #tpu.memory_space<vmem>>, vector<32x16xbf16>
      %cst_75 = arith.constant dense<0.000000e+00> : vector<1x16xf32>
      %149 = tpu.matmul %147, %148, %cst_75 {dimension_numbers = #tpu.dot_dimension_numbers<[1], [0], [0], [1], [0, 0, 1, 1], [], []>} : vector<1x32xbf16>, vector<32x16xbf16>, vector<1x16xf32> -> vector<1x16xf32>
      %c0_76 = arith.constant 0 : index
      %c0_77 = arith.constant 0 : index
      %c0_78 = arith.constant 0 : index
      %150 = vector.load %arg22[%c0_76, %c0_77, %c0_78] : memref<1x1x16xf32, #tpu.memory_space<vmem>>, vector<1x1x16xf32>
      %151 = vector.shape_cast %150 : vector<1x1x16xf32> to vector<1x16xf32>
      %152 = vector.shape_cast %149 : vector<1x16xf32> to vector<1x1x16xf32>
      tpu.vector_store %arg22[%c0_76, %c0_77, %c0_78], %152 {strides = array<i32>} : memref<1x1x16xf32, #tpu.memory_space<vmem>>, vector<1x1x16xf32>,
    } else {
    }
    return
  }
  func.func @transform_0(%arg0: i32, %arg1: i32) -> (i32, i32, i32) {
    %c0_i32 = arith.constant 0 : i32
    %c0_i32_0 = arith.constant 0 : i32
    %c0_i32_1 = arith.constant 0 : i32
    return %arg0, %c0_i32, %c0_i32_0 : i32, i32, i32
  }
  func.func @transform_1(%arg0: i32, %arg1: i32) -> (i32, i32) {
    %c0_i32 = arith.constant 0 : i32
    %c0_i32_0 = arith.constant 0 : i32
    %c0_i32_1 = arith.constant 0 : i32
    return %c0_i32, %c0_i32_0 : i32, i32
  }
  func.func @transform_2(%arg0: i32, %arg1: i32) -> (i32, i32) {
    %c0_i32 = arith.constant 0 : i32
    %c0_i32_0 = arith.constant 0 : i32
    %c0_i32_1 = arith.constant 0 : i32
    return %c0_i32, %c0_i32_0 : i32, i32
  }
  func.func @transform_3(%arg0: i32, %arg1: i32) -> (i32, i32) {
    %c0_i32 = arith.constant 0 : i32
    %c0_i32_0 = arith.constant 0 : i32
    %c0_i32_1 = arith.constant 0 : i32
    return %c0_i32, %c0_i32_0 : i32, i32
  }
  func.func @transform_4(%arg0: i32, %arg1: i32) -> (i32, i32) {
    %c0_i32 = arith.constant 0 : i32
    %c0_i32_0 = arith.constant 0 : i32
    %c0_i32_1 = arith.constant 0 : i32
    return %c0_i32, %c0_i32_0 : i32, i32
  }
  func.func @transform_5(%arg0: i32, %arg1: i32) -> (i32, i32, i32) {
    %c0_i32 = arith.constant 0 : i32
    %c0_i32_0 = arith.constant 0 : i32
    %c0_i32_1 = arith.constant 0 : i32
    return %arg1, %c0_i32, %c0_i32_0 : i32, i32, i32
  }
  func.func @transform_6(%arg0: i32, %arg1: i32) -> (i32, i32, i32) {
    %c0_i32 = arith.constant 0 : i32
    %c0_i32_0 = arith.constant 0 : i32
    %c0_i32_1 = arith.constant 0 : i32
    return %arg1, %c0_i32, %c0_i32_0 : i32, i32, i32
  }
  func.func @transform_7(%arg0: i32, %arg1: i32) -> (i32, i32, i32, i32) {
    %c0_i32 = arith.constant 0 : i32
    %c0_i32_0 = arith.constant 0 : i32
    %c0_i32_1 = arith.constant 0 : i32
    %c0_i32_2 = arith.constant 0 : i32
    return %arg1, %c0_i32, %c0_i32_0, %c0_i32_1 : i32, i32, i32, i32
  }
  func.func @transform_8(%arg0: i32, %arg1: i32) -> (i32, i32, i32, i32) {
    %c0_i32 = arith.constant 0 : i32
    %c0_i32_0 = arith.constant 0 : i32
    %c0_i32_1 = arith.constant 0 : i32
    %c0_i32_2 = arith.constant 0 : i32
    return %arg1, %c0_i32, %c0_i32_0, %c0_i32_1 : i32, i32, i32, i32
  }
  func.func @transform_9(%arg0: i32, %arg1: i32) -> (i32, i32, i32, i32) {
    %c0_i32 = arith.constant 0 : i32
    %c0_i32_0 = arith.constant 0 : i32
    %c0_i32_1 = arith.constant 0 : i32
    %c0_i32_2 = arith.constant 0 : i32
    return %arg1, %c0_i32, %c0_i32_0, %c0_i32_1 : i32, i32, i32, i32
  }
  func.func @transform_10(%arg0: i32, %arg1: i32) -> (i32, i32, i32) {
    %c0_i32 = arith.constant 0 : i32
    %c0_i32_0 = arith.constant 0 : i32
    %c0_i32_1 = arith.constant 0 : i32
    return %arg1, %c0_i32, %c0_i32_0 : i32, i32, i32
  }
  func.func @transform_11(%arg0: i32, %arg1: i32) -> (i32, i32, i32) {
    %c0_i32 = arith.constant 0 : i32
    %c0_i32_0 = arith.constant 0 : i32
    %c0_i32_1 = arith.constant 0 : i32
    return %arg1, %c0_i32, %c0_i32_0 : i32, i32, i32
  }
  func.func @transform_12(%arg0: i32, %arg1: i32) -> (i32, i32, i32) {
    %c0_i32 = arith.constant 0 : i32
    %c0_i32_0 = arith.constant 0 : i32
    %c0_i32_1 = arith.constant 0 : i32
    return %arg1, %c0_i32, %c0_i32_0 : i32, i32, i32
  }
  func.func @transform_13(%arg0: i32, %arg1: i32) -> (i32, i32, i32) {
    %c0_i32 = arith.constant 0 : i32
    %c0_i32_0 = arith.constant 0 : i32
    %c0_i32_1 = arith.constant 0 : i32
    return %arg1, %c0_i32, %c0_i32_0 : i32, i32, i32
  }
  func.func @transform_14(%arg0: i32, %arg1: i32) -> (i32, i32, i32) {
    %c0_i32 = arith.constant 0 : i32
    %c0_i32_0 = arith.constant 0 : i32
    %c0_i32_1 = arith.constant 0 : i32
    return %arg1, %c0_i32, %c0_i32_0 : i32, i32, i32
  }
  func.func @transform_15(%arg0: i32, %arg1: i32) -> (i32, i32, i32) {
    %c0_i32 = arith.constant 0 : i32
    %c0_i32_0 = arith.constant 0 : i32
    %c0_i32_1 = arith.constant 0 : i32
    return %arg1, %c0_i32, %c0_i32_0 : i32, i32, i32
  }
  func.func @transform_16(%arg0: i32, %arg1: i32) -> (i32, i32, i32) {
    %c0_i32 = arith.constant 0 : i32
    %c0_i32_0 = arith.constant 0 : i32
    %c0_i32_1 = arith.constant 0 : i32
    return %arg1, %c0_i32, %c0_i32_0 : i32, i32, i32
  }
  func.func @transform_17(%arg0: i32, %arg1: i32) -> (i32, i32) {
    %c0_i32 = arith.constant 0 : i32
    %c0_i32_0 = arith.constant 0 : i32
    %c0_i32_1 = arith.constant 0 : i32
    return %c0_i32, %c0_i32_0 : i32, i32
  }
  func.func @transform_18(%arg0: i32, %arg1: i32) -> (i32, i32) {
    %c0_i32 = arith.constant 0 : i32
    %c0_i32_0 = arith.constant 0 : i32
    %c0_i32_1 = arith.constant 0 : i32
    return %c0_i32, %c0_i32_0 : i32, i32
  }
  func.func @transform_19(%arg0: i32, %arg1: i32) -> (i32, i32) {
    %c0_i32 = arith.constant 0 : i32
    %c0_i32_0 = arith.constant 0 : i32
    %c0_i32_1 = arith.constant 0 : i32
    return %c0_i32, %c0_i32_0 : i32, i32
  }
  func.func @transform_20(%arg0: i32, %arg1: i32) -> (i32, i32, i32) {
    %c0_i32 = arith.constant 0 : i32
    %c0_i32_0 = arith.constant 0 : i32
    %c0_i32_1 = arith.constant 0 : i32
    return %arg0, %c0_i32, %c0_i32_0 : i32, i32, i32
  }
}

</mosaic_0001>

<bundles_post_ra>
// kernel: clip_image_features.1
= control target key start
LH: loop header
LB: loop body
LE: loop exit
PB: predicated region body
PF: predicated region fallthrough
CT: control target
= control target key end

     0   :  { %s3186_s0 = inlined_call_operand.vmem [shape: f32[2,5,192], index: 0, kind: input, shape index: {}]   ;;  %s3187_s1 = inlined_call_operand.vmem [shape: bf16[192,32], index: 1, kind: input, shape index: {}]   ;;  %s3188_s2 = inlined_call_operand.vmem [shape: f32[5,32], index: 2, kind: input, shape index: {}]   ;;  %s3189_s3 = inlined_call_operand.vmem [shape: f32[1,32], index: 3, kind: input, shape index: {}]   ;;  %s3190_s4 = inlined_call_operand.vmem [shape: f32[1,32], index: 4, kind: input, shape index: {}]   ;;  %s3191_s5 = inlined_call_operand.vmem [shape: f32[2,1,32], index: 5, kind: input, shape index: {}]   ;;  %s3192_s6 = inlined_call_operand.vmem [shape: f32[2,1,32], index: 6, kind: input, shape index: {}]   ;;  %s3193_s7 = inlined_call_operand.vmem [shape: bf16[2,12,32,8], index: 7, kind: input, shape index: {}]   ;;  %s3194_s8 = inlined_call_operand.vmem [shape: f32[2,12,1,8], index: 8, kind: input, shape index: {}]   ;;  %s3195_s9 = inlined_call_operand.vmem [shape: bf16[2,4,8,32], index: 9, kind: input, shape index: {}]   ;;  %s3196_s10 = inlined_call_operand.vmem [shape: f32[2,1,32], index: 10, kind: input, shape index: {}]   ;;  %s3197_s11 = inlined_call_operand.vmem [shape: f32[2,1,32], index: 11, kind: input, shape index: {}]   ;;  %s3198_s12 = inlined_call_operand.vmem [shape: f32[2,1,32], index: 12, kind: input, shape index: {}]   ;;  %s3199_s13 = inlined_call_operand.vmem [shape: bf16[2,32,64], index: 13, kind: input, shape index: {}]   ;;  %s3200_s14 = inlined_call_operand.vmem [shape: f32[2,1,64], index: 14, kind: input, shape index: {}]   ;;  %s3201_s15 = inlined_call_operand.vmem [shape: bf16[2,64,32], index: 15, kind: input, shape index: {}]   ;;  %s3202_s16 = inlined_call_operand.vmem [shape: f32[2,1,32], index: 16, kind: input, shape index: {}]   ;;  %s3203_s17 = inlined_call_operand.vmem [shape: f32[1,32], index: 17, kind: input, shape index: {}]   ;;  %s3204_s18 = inlined_call_operand.vmem [shape: f32[1,32], index: 18, kind: input, shape index: {}]   ;;  %s3205_s19 = inlined_call_operand.vmem [shape: bf16[32,16], index: 19, kind: input, shape index: {}]   ;;  %s3206_s20 = inlined_call_operand.hbm [shape: f32[2,1,16], index: 20, kind: output, shape index: {}]  }
   0x1   :  { %3222 = sst [smem:[#allocation18_spill]] %s3186_s0 }
   0x2   :  { %3223 = sst [smem:[#allocation19_spill]] %s3187_s1 }
   0x3   :  { %3224 = sst [smem:[#allocation20_spill]] %s3188_s2 }
   0x4   :  { %3225 = sst [smem:[#allocation21_spill]] %s3189_s3 }
   0x5   :  { %3226 = sst [smem:[#allocation22_spill]] %s3190_s4 }
   0x6   :  { %3227 = sst [smem:[#allocation23_spill]] %s3192_s6 }
   0x7   :  { %3228 = sst [smem:[#allocation24_spill]] %s3193_s7 }
   0x8   :  { %3229 = sst [smem:[#allocation25_spill]] %s3194_s8 }
   0x9   :  { %3230 = sst [smem:[#allocation26_spill]] %s3195_s9 }
   0xa   :  { %3231 = sst [smem:[#allocation27_spill]] %s3203_s17 }
   0xb   :  { %3232 = sst [smem:[#allocation28_spill]] %s3204_s18 }
   0xc   :  { %3233 = sst [smem:[#allocation29_spill]] %s3205_s19 }
   0xd   :  { %3234 = sst [smem:[#allocation30_spill]] %s3206_s20 }
   0xe   :  { %25 = vsyncpa [#allocation4], 0 }
   0xf   :  { %27 = vsyncpa [#allocation4 + $0x1], 0  ;;  %s2788_s1 = smov 0   ;;  %s2790_s22 = smov 0  }
  0x10   :  { %s2792_s23 = smov 0   ;;  %s2794_s24 = smov 0  }
  0x11   :  { %s2796_s2 = smov 0   ;;  %s2798_s25 = smov 0  }
  0x12   :  { %s2800_s3 = smov 0   ;;  %s2802_s26 = smov 0  }
  0x13 LB: > { %3235 = sst [smem:[#allocation6_spill]] %s2650_s1  ;;  %s2184_s27 = sadd.s32 4294967295, %s2678_s26   ;;  %s2678_s26 = sphi %s2802_s26, %s33_s26   ;;  %s2674_s3 = sphi %s2800_s3, %s3284_s3   ;;  %s2670_s25 = sphi %s2798_s25, %s3283_s25   ;;  %s2666_s2 = sphi %s2796_s2, %s3282_s2   ;;  %s2662_s24 = sphi %s2794_s24, %s3281_s24   ;;  %s2658_s23 = sphi %s2792_s23, %s3280_s23   ;;  %s2654_s22 = sphi %s2790_s22, %s3286_s22   ;;  %s2650_s1 = sphi %s2788_s1, %s3285_s1  }
  0x14   : > { %3236 = sst [smem:[#allocation7_spill]] %s2658_s23  ;;  %s2185_s28 = sadd.s32 4294967294, %s2678_s26  }
  0x15   : > { %3237 = sst [smem:[#allocation8_spill]] %s2662_s24  ;;  %s42_s4 = sadd.s32 1, %s2670_s25 }
  0x16   : > { %3238 = sst [smem:[#allocation9_spill]] %s2666_s2  ;;  %p43_p0 = scmp.ge.s32.totalorder %s42_s4, 2 }
  0x17   : > { %3239 = sst [smem:[#allocation10_spill]] %s2670_s25  ;;  %s45_s29 = sadd.s32 1, %s2674_s3 }
  0x18   : > { %3240 = sst [smem:[#allocation11_spill]] %s2674_s3  ;;  %p547_p1 = scmp.ne.s32.totalorder %s2658_s23, %s2654_s22 }
  0x19   : > { %3241 = sst [smem:[#allocation12_spill]] %s2678_s26  ;;  %p548_p2 = scmp.eq.s32.totalorder %s2184_s27, 3 }
  0x1a   : > { %s3288_s4 = smov (%p43_p0, %s42_s4), 0  ;;  %s3290_s29 = smov (!%p43_p0, %s45_s29), %s2674_s3 }
  0x1b   : > { %3242 = sst [smem:[#allocation13_spill]] %s3288_s4  ;;  %p2837_p3 = por %p548_p2, %p547_p1 }
  0x1c   : > { %p553_p4 = scmp.ne.s32.totalorder %s2654_s22, %s2650_s1  ;;  %p47_p5 = scmp.ge.s32.totalorder %s3290_s29, 2 }
  0x1d   : > { %s3243_s30 = scalar_select %p2837_p3, 1, 0 }
  0x1e   : > { %p554_p6 = scmp.eq.s32.totalorder %s2185_s28, 3  ;;  %p2188_p7 = scmp.ge.s32.totalorder %s2678_s26, 1 }
  0x1f   : > { %3244 = sst [smem:[#allocation14_spill]] %s3243_s30  ;;  %p682_p8 = scmp.lt.s32.totalorder %s2678_s26, 5 }
  0x20   : > { %s3292_s29 = smov (%p47_p5, %s3290_s29), 0  ;;  %p2847_p9 = por %p554_p6, %p553_p4 }
  0x21   : > { %3245 = sst [smem:[#allocation15_spill]] %s3292_s29  ;;  %p683_p10 = pnand %p2188_p7, %p682_p8 }
  0x22   : > { %s3246_s0 = scalar_select %p2847_p9, 1, 0 }
  0x23   : > { %s534_s21 = ssub.s32 %s2674_s3, %s3292_s29  ;;  %s537_s27 = sadd.s32 1, %s2658_s23 }
  0x24   : > { %3247 = sst [smem:[#allocation16_spill]] %s3246_s0  ;;  %p535_p11 = scmp.eq.s32.totalorder %s534_s21, 0 }
  0x25   : > { %686 = sbr.rel (%p683_p10) target bundleno = 2592 (0xa20), region = 100  ;;  %p784_p12 = scmp.lt.s32.totalorder (!%p683_p10), %s2666_s2, 1 }
  0x26   : > { %s2855_s4 = scalar_select %p535_p11, %s2658_s23, %s537_s27  }
  0x27   : > { %p789_p13 = scmp.lt.s32.totalorder (!%p683_p10), %s2662_s24, 1  ;;  %s3249_s3 = sld [smem:[#allocation18_spill]] (!%p683_p10) }
  0x28   : > { %3248 = sst [smem:[#allocation17_spill]] %s2855_s4 }
  0x29   : > { %s3251_s7 = sld [smem:[#allocation24_spill]] (!%p683_p10) }
  0x2a   : > { %s785_s25 = scalar_select %p784_p12, %s2666_s2, 1 }
  0x2b   : > { %s2862_s1 = scalar_select %p789_p13, %s2662_s24, 1 }
  0x2c   : > { %s2407_s21 = sshll.u32 %s785_s25, 4  ;;  %s3252_s9 = sld [smem:[#allocation26_spill]] }
  0x2d   : > { %s2867_s28 = scalar_lea.vmem %s3249_s3, %s2407_s21  ;;  %s2455_s2 = smul.u32 192, %s2862_s1 }
  0x2e   : > { %s2456_s18 = smul.u32 12, %s2862_s1  ;;  %s2408_s17 = sshll.u32 %s2862_s1, 4 }
  0x2f   : > { %s2883_s24 = scalar_lea.vmem %s3251_s7, %s2455_s2  ;;  %s3253_s8 = sld [smem:[#allocation25_spill]] }
  0x30   : > { %s833_s20 = scalar_lea.vmem %s3202_s16, %s2862_s1  ;;  %s3254_s2 = sand.u32 1, %s2654_s22  }
  0x31   : > { %s2928_s25 = scalar_lea.vmem [#allocation3], %s3254_s2  ;;  %s3255_s29 = sld [smem:[#allocation8_spill]] }
  0x32   : > { %s2888_s21 = scalar_lea.vmem %s3252_s9, %s2408_s17  ;;  %s2910_s9 = scalar_lea.vmem %s3199_s13, %s2408_s17 }
  0x35   : > { %s2893_s27 = scalar_lea.vmem %s3253_s8, %s2456_s18  ;;  %s2410_s8 = sshll.u32 %s2862_s1, 5 }
  0x36   : > { %s2924_s19 = scalar_lea.vmem %s3201_s15, %s2410_s8 }
  0x37   : > { %p2198_p0 = scmp.ne.s32.totalorder %s3255_s29, 0 }
  0x38   : > { %s3256_s23 = sld [smem:[#allocation19_spill]] (!%p2198_p0) }
  0x39   : > { %838 = sbr.rel (%p2198_p0) target bundleno = 493 (0x1ed), region = 104  ;;  %s3258_s3 = sld [smem:[#allocation20_spill]] (!%p2198_p0) }
  0x3a   : > { %s3259_s26 = sld [smem:[#allocation21_spill]] (!%p2198_p0) }
  0x3b   : > { %s3260_s6 = sld [smem:[#allocation22_spill]] (!%p2198_p0) }
  0x3e   : > { %s3257_s18 = smov %s3256_s23  ;;  %v2418_v0 = vld [vmem:[%s3256_s23 + $0x38] sm:$0xff]  ;;  %v840_v8 = vld [vmem:[%s2867_s28 + $0x8] sm:$0x1f]  ;;  %vm940_vm0 = vcmask 523264   ;;  %v839_v14 = vld [vmem:[%s2867_s28] sm:$0x1f] }
  0x3f   : > { %v2422_v1 = vld [vmem:[%s3257_s18 + $0x58] sm:$0xff]  ;;  %944 = vmatpush.bf16.msra.mxu0 %v2418_v0  ;;  %v2417_v2 = vld [vmem:[%s3257_s18 + $0x30] sm:$0xff]  ;;  %v2416_v4 = vld [vmem:[%s3257_s18 + $0x28] sm:$0xff]  ;;  %v842_v10 = vpack.c.bf16 %v840_v8, %v840_v8  ;;  %v841_v15 = vpack.c.bf16 %v839_v14, %v839_v14  ;;  %vm972_vm1 = vcmask 258048   ;;  %v2680_v24 = vmov 32.0  }
  0x40   : > { %961 = vmatpush.bf16.msra.mxu1 %v2422_v1  ;;  %v2421_v3 = vld [vmem:[%s3257_s18 + $0x50] sm:$0xff]  ;;  %v2420_v5 = vld [vmem:[%s3257_s18 + $0x48] sm:$0xff]  ;;  %v2415_v6 = vld [vmem:[%s3257_s18 + $0x20] sm:$0xff]  ;;  %2533 = vrcp.f32 %v2680_v24 }
  0x41   : > { %v2419_v7 = vld [vmem:[%s3257_s18 + $0x40] sm:$0xff]  ;;  %v2414_v9 = vld [vmem:[%s3257_s18 + $0x18] sm:$0xff]  ;;  %v2413_v11 = vld [vmem:[%s3257_s18 + $0x10] sm:$0xff] }
  0x42   : > { %v2412_v12 = vld [vmem:[%s3257_s18 + $0x8] sm:$0xff]  ;;  %v2411_v13 = vld [vmem:[%s3257_s18] sm:$0xff] }
  0x43   : > { %945 = vmatpush.bf16.msra.mxu0 %v2417_v2  ;;  %v867_v18 = vld [vmem:[%s3258_s3] sm:$0x1f] }
  0x44   : > { %962 = vmatpush.bf16.msra.mxu1 %v2421_v3  ;;  %v2531_v45 = vld [vmem:[%s3259_s26] ss:$0 sm:$0xff] }
  0x45   : > { %v2532_v47 = vld [vmem:[%s3260_s6] ss:$0 sm:$0xff] }
  0x46   : > { %v2534_v25 = vpop.eup %2533 }
  0x47   : > { %946 = vmatpush.bf16.msra.mxu0 %v2416_v4  ;;  %v977_v26 = vmul.f32 32.0, %v2534_v25  ;;  %vm981_vm2 = vweird.f32 %v2534_v25 }
  0x48   : > { %963 = vmatpush.bf16.msra.mxu1 %v2420_v5 }
  0x49   : > { %v978_v27 = vsub.f32 1.0, %v977_v26 }
  0x4b   : > { %947 = vmatpush.bf16.msra.mxu0 %v2415_v6  ;;  %v979_v28 = vmul.f32 %v2534_v25, %v978_v27 }
  0x4c   : > { %964 = vmatpush.bf16.msra.mxu1 %v2419_v7 }
  0x4d   : > { %v980_v29 = vadd.f32 %v2534_v25, %v979_v28 }
  0x4f   : > { %948 = vmatpush.bf16.msra.mxu0 %v2414_v9  ;;  %2247 = vmatmul.msk.bf16.vlgmr.msra.gmra.mxu1 %vm940_vm0, %v842_v10  ;;  %v982_v30 = vsel %vm981_vm2, %v2534_v25, %v980_v29 }
  0x53   : > { %949 = vmatpush.bf16.msra.mxu0 %v2413_v11 }
  0x57   : > { %950 = vmatpush.bf16.msra.mxu0 %v2412_v12 }
  0x5b   : > { %951 = vmatpush.bf16.msra.mxu0 %v2411_v13 }
  0x5e   : > { %952 = vmatmul.bf16.vlgmr.msra.gmra.mxu0 %v841_v15 }
  0xcc   : > { %v966_v16 = vpop.f32.mrf.mxu1 }
  0xd4   : > { %v968_v17 = vpop.f32.mrf.mxu1 }
  0xdb   : > { %v953_v19 = vpop.f32.mrf.mxu0 }
  0xdc   : > { %v954_v20 = vadd.f32 %v953_v19, %v867_v18 }
  0xde   : > { %v967_v21 = vadd.f32 %v966_v16, %v954_v20 }
  0xe0   : > { %v973_v22 = vsel %vm972_vm1, %v967_v21, 0.0 }
  0xe1   : > { %974 = vadd.xlane.f32.xlu0 %v973_v22 }
  0xe3   : > { %v955_v23 = vpop.f32.mrf.mxu0 }
 0x154   : > { %v975_v31 = vpop.xlane.xlu0 %974 }
 0x155   : > { %v983_v32 = vmul.f32 %v982_v30, %v975_v31 }
 0x157   : > { %v984_v33 = vsub.f32 %v967_v21, %v983_v32 }
 0x159   : > { %v985_v34 = vmul.f32 %v984_v33, %v984_v33 }
 0x15b   : > { %v986_v35 = vsel %vm972_vm1, %v985_v34, 0.0 }
 0x15c   : > { %987 = vadd.xlane.f32.xlu0 %v986_v35 }
 0x1cf   : > { %v988_v36 = vpop.xlane.xlu0 %987 }
 0x1d0   : > { %v989_v37 = vmul.f32 %v988_v36, %v982_v30 }
 0x1d2   : > { %v990_v38 = vadd.f32 1e-05, %v989_v37 }
 0x1d4   : > { %2535 = vrsqrt.f32 %v990_v38  ;;  %vm997_vm4 = vweird.f32 %v990_v38 }
 0x1da   : > { %v2536_v39 = vpop.eup %2535 }
 0x1db   : > { %v992_v40 = vmul.f32 %v2536_v39, %v990_v38  ;;  %vm998_vm3 = vweird.f32 %v2536_v39 }
 0x1dc   : > { %vm999_vm5 = vmor %vm997_vm4, %vm998_vm3 }
 0x1dd   : > { %v993_v41 = vmul.f32 %v2536_v39, %v992_v40 }
 0x1df   : > { %v994_v42 = vmul.f32 0.5, %v993_v41 }
 0x1e1   : > { %v995_v43 = vsub.f32 1.5, %v994_v42 }
 0x1e3   : > { %v996_v44 = vmul.f32 %v2536_v39, %v995_v43 }
 0x1e5   : > { %v1000_v46 = vsel %vm999_vm5, %v2536_v39, %v996_v44 }
 0x1e6   : > { %v1001_v48 = vmul.f32 %v1000_v46, %v984_v33 }
 0x1e8   : > { %v1005_v49 = vmul.f32 %v2531_v45, %v1001_v48 }
 0x1ea   : > { %v1009_v50 = vadd.f32 %v2532_v47, %v1005_v49 }
 0x1ec   : > { %1010 = vst.msk [vmem:[#allocation2] sm:$0x1f] %vm972_vm1, %v1009_v50 }
 0x1ed PF: > { %vm1014_vm6 = vcmask 258048   ;;  %v2681_v53 = vmov 32.0   ;;  %v2424_v1 = vld [vmem:[%s2883_s24 + $0x8] sm:$0xff]  ;;  %v2426_v2 = vld [vmem:[%s2883_s24 + $0x18] sm:$0xff]  ;;  %v2423_v5 = vld [vmem:[%s2883_s24] sm:$0xff]  ;;  %s3261_s29 = scalar_lea.vmem %s3191_s5, %s2862_s1  ;;  %s3262_s4 = sld [smem:[#allocation23_spill]] }
 0x1ee   : > { %2556 = vrcp.f32 %v2681_v53  ;;  %v2428_v3 = vld [vmem:[%s2883_s24 + $0x28] sm:$0xff]  ;;  %v2430_v4 = vld [vmem:[%s2883_s24 + $0x38] sm:$0xff]  ;;  %1171 = vmatpush.bf16.msra.mxu0 %v2424_v1  ;;  %1196 = vmatpush.bf16.msra.mxu1 %v2426_v2  ;;  %v2425_v6 = vld [vmem:[%s2883_s24 + $0x10] sm:$0xff]  ;;  %vm1161_vm11 = vcmask 261120   ;;  %vm1461_vm12 = vcmask 64512   ;;  %vm1595_vm13 = vcmask 1041408   ;;  %s3265_s23 = scalar_lea.vmem %s3197_s11, %s2862_s1  ;;  %s3266_s8 = scalar_lea.vmem %s3198_s12, %s2862_s1 }
 0x1ef   : > { %1221 = vmatpush.bf16.msra.mxu2 %v2428_v3  ;;  %1246 = vmatpush.bf16.msra.mxu3 %v2430_v4  ;;  %v2427_v7 = vld [vmem:[%s2883_s24 + $0x20] sm:$0xff]  ;;  %v2429_v8 = vld [vmem:[%s2883_s24 + $0x30] sm:$0xff]  ;;  %v2432_v10 = vld [vmem:[%s2883_s24 + $0x48] sm:$0xff]  ;;  %vm1596_vm14 = vcmask 1042432   ;;  %vm1538_vm15 = vcmask 36864   ;;  %vm1591_vm0 = vcmask 39936   ;;  %s3267_s2 = scalar_lea.vmem %s3200_s14, %s2862_s1 }
 0x1f0   : > { %v2434_v11 = vld [vmem:[%s2883_s24 + $0x58] sm:$0xff]  ;;  %v2436_v12 = vld [vmem:[%s2883_s24 + $0x68] sm:$0xff]  ;;  %v2431_v15 = vld [vmem:[%s2883_s24 + $0x40] sm:$0xff]  ;;  %vm1683_vm1 = vcmask 1043456   ;;  %s3268_s17 = sld [smem:[#allocation8_spill]] }
 0x1f1   : > { %v2438_v14 = vld [vmem:[%s2883_s24 + $0x78] sm:$0xff]  ;;  %v2433_v16 = vld [vmem:[%s2883_s24 + $0x50] sm:$0xff]  ;;  %v2435_v18 = vld [vmem:[%s2883_s24 + $0x60] sm:$0xff] }
 0x1f2   : > { %1172 = vmatpush.bf16.msra.mxu0 %v2423_v5  ;;  %1197 = vmatpush.bf16.msra.mxu1 %v2425_v6  ;;  %v2437_v19 = vld [vmem:[%s2883_s24 + $0x70] sm:$0xff]  ;;  %v2537_v26 = vld [vmem:[%s3261_s29] ss:$0 sm:$0xff]  ;;  %v2440_v33 = vld [vmem:[%s2883_s24 + $0x88] sm:$0xff] }
 0x1f3   : > { %v2981_v51 = vld [vmem:[#allocation2] sm:$0x1f]  ;;  %1222 = vmatpush.bf16.msra.mxu2 %v2427_v7  ;;  %1247 = vmatpush.bf16.msra.mxu3 %v2429_v8  ;;  %s3263_s3 = scalar_lea.vmem %s3262_s4, %s2862_s1  ;;  %v2442_v34 = vld [vmem:[%s2883_s24 + $0x98] sm:$0xff]  ;;  %v2444_v35 = vld [vmem:[%s2883_s24 + $0xa8] sm:$0xff] }
 0x1f4   : > { %v1015_v52 = vsel %vm1014_vm6, %v2981_v51, 0.0  ;;  %v2557_v54 = vpop.eup %2556  ;;  %v2538_v28 = vld [vmem:[%s3263_s3] ss:$0 sm:$0xff]  ;;  %v2446_v36 = vld [vmem:[%s2883_s24 + $0xb8] sm:$0xff]  ;;  %v2441_v38 = vld [vmem:[%s2883_s24 + $0x90] sm:$0xff] }
 0x1f5   : > { %1016 = vadd.xlane.f32.xlu0 %v1015_v52  ;;  %v1019_v55 = vmul.f32 32.0, %v2557_v54  ;;  %vm1023_vm7 = vweird.f32 %v2557_v54  ;;  %v2439_v37 = vld [vmem:[%s2883_s24 + $0x80] sm:$0xff]  ;;  %v2445_v40 = vld [vmem:[%s2883_s24 + $0xb0] sm:$0xff] }
 0x1f6   : > { %1271 = vmatpush.bf16.msrb.mxu0 %v2432_v10  ;;  %1296 = vmatpush.bf16.msrb.mxu1 %v2434_v11  ;;  %v2443_v39 = vld [vmem:[%s2883_s24 + $0xa0] sm:$0xff]  ;;  %p2395_p1 = scmp.ne.s32.totalorder %s3268_s17, 1 }
 0x1f7   : > { %v1020_v56 = vsub.f32 1.0, %v1019_v55  ;;  %1321 = vmatpush.bf16.msrb.mxu2 %v2436_v12  ;;  %1346 = vmatpush.bf16.msrb.mxu3 %v2438_v14  ;;  %v2543_v47 = vld [vmem:[%s2893_s27 + $0x4] ss:$0 sm:$0xff]  ;;  %v2544_v48 = vld [vmem:[%s2893_s27 + $0x5] ss:$0 sm:$0xff]  ;;  %s3269_s7 = sld [smem:[#allocation29_spill]] (!%p2395_p1) }
 0x1f8   : > { %v2542_v10 = vld [vmem:[%s2893_s27 + $0x3] ss:$0 sm:$0xff] }
 0x1f9   : > { %v1021_v57 = vmul.f32 %v2557_v54, %v1020_v56  ;;  %v2539_v56 = vld [vmem:[%s2893_s27] ss:$0 sm:$0xff] }
 0x1fa   : > { %1272 = vmatpush.bf16.msrb.mxu0 %v2431_v15  ;;  %1297 = vmatpush.bf16.msrb.mxu1 %v2433_v16 }
 0x1fb   : > { %v1022_v58 = vadd.f32 %v2557_v54, %v1021_v57  ;;  %1322 = vmatpush.bf16.msrb.mxu2 %v2435_v18  ;;  %1347 = vmatpush.bf16.msrb.mxu3 %v2437_v19  ;;  %v2540_v57 = vld [vmem:[%s2893_s27 + $0x1] ss:$0 sm:$0xff]  ;;  %v2548_v18 = vld [vmem:[%s2893_s27 + $0x9] ss:$0 sm:$0xff] }
 0x1fd   : > { %v2985_v59 = vsel %vm1023_vm7, %v2557_v54, %v1022_v58 }
 0x268   : > { %v1017_v60 = vpop.xlane.xlu0 %1016 }
 0x269   : > { %v1025_v61 = vmul.f32 %v2985_v59, %v1017_v60 }
 0x26b   : > { %v1026_v62 = vsub.f32 %v2981_v51, %v1025_v61  ;;  %v2545_v61 = vld [vmem:[%s2893_s27 + $0x6] ss:$0 sm:$0xff] }
 0x26d   : > { %v1027_v63 = vmul.f32 %v1026_v62, %v1026_v62 }
 0x26f   : > { %v1028_v0 = vsel %vm1014_vm6, %v1027_v63, 0.0 }
 0x270   : > { %1029 = vadd.xlane.f32.xlu0 %v1028_v0 }
 0x2e3   : > { %v1030_v9 = vpop.xlane.xlu0 %1029 }
 0x2e4   : > { %v1031_v13 = vmul.f32 %v1030_v9, %v2985_v59  ;;  %v2541_v9 = vld [vmem:[%s2893_s27 + $0x2] ss:$0 sm:$0xff] }
 0x2e6   : > { %v1032_v17 = vadd.f32 1e-05, %v1031_v13 }
 0x2e8   : > { %2558 = vrsqrt.f32 %v1032_v17  ;;  %vm1039_vm9 = vweird.f32 %v1032_v17 }
 0x2ee   : > { %v2559_v20 = vpop.eup %2558 }
 0x2ef   : > { %v1034_v21 = vmul.f32 %v2559_v20, %v1032_v17  ;;  %vm1040_vm8 = vweird.f32 %v2559_v20  ;;  %v2547_v17 = vld [vmem:[%s2893_s27 + $0x8] ss:$0 sm:$0xff] }
 0x2f0   : > { %vm1041_vm10 = vmor %vm1039_vm9, %vm1040_vm8 }
 0x2f1   : > { %v1035_v22 = vmul.f32 %v2559_v20, %v1034_v21 }
 0x2f3   : > { %v1036_v23 = vmul.f32 0.5, %v1035_v22 }
 0x2f5   : > { %v1037_v24 = vsub.f32 1.5, %v1036_v23  ;;  %v2682_v23 = vmov 65535  }
 0x2f7   : > { %v1038_v25 = vmul.f32 %v2559_v20, %v1037_v24  ;;  %v1597_v24 = vsel %vm1595_vm13, 4294967295, %v2682_v23 }
 0x2f9   : > { %v1042_v27 = vsel %vm1041_vm10, %v2559_v20, %v1038_v25  ;;  %vm1897_vm10 = vcmask 523264  }
 0x2fa   : > { %v1043_v29 = vmul.f32 %v1042_v27, %v1026_v62  ;;  %v2546_v62 = vld [vmem:[%s2893_s27 + $0x7] ss:$0 sm:$0xff] }
 0x2fc   : > { %v1047_v30 = vmul.f32 %v2537_v26, %v1043_v29 }
 0x2fe   : > { %v1051_v31 = vadd.f32 %v2538_v28, %v1047_v30 }
 0x300   : > { %v1052_v32 = vpack.c.bf16 %v1051_v31, %v1051_v31  ;;  %v1598_v31 = vsel %vm1596_vm14, %v1597_v24, 0 }
 0x302   : > { %2256 = vmatmul.msk.bf16.vlgmr.msra.gmra.mxu0 %vm1161_vm11, %v1052_v32  ;;  %2265 = vmatmul.msk.bf16.vlgmr.msra.gmra.mxu1 %vm1161_vm11, %v1052_v32 }
 0x303   : > { %2274 = vmatmul.msk.bf16.vlgmr.msra.gmra.mxu2 %vm1161_vm11, %v1052_v32  ;;  %2283 = vmatmul.msk.bf16.vlgmr.msra.gmra.mxu3 %vm1161_vm11, %v1052_v32 }
 0x304   : > { %1371 = vmatpush.bf16.msra.mxu0 %v2440_v33  ;;  %1396 = vmatpush.bf16.msra.mxu1 %v2442_v34  ;;  %v2549_v34 = vld [vmem:[%s2893_s27 + $0xa] ss:$0 sm:$0xff] }
 0x305   : > { %1421 = vmatpush.bf16.msra.mxu2 %v2444_v35  ;;  %1446 = vmatpush.bf16.msra.mxu3 %v2446_v36  ;;  %v2550_v35 = vld [vmem:[%s2893_s27 + $0xb] ss:$0 sm:$0xff]  ;;  %s3264_s27 = scalar_lea.vmem %s3196_s10, %s2862_s1 }
 0x308   : > { %1372 = vmatpush.bf16.msra.mxu0 %v2439_v37  ;;  %1397 = vmatpush.bf16.msra.mxu1 %v2441_v38 }
 0x309   : > { %1422 = vmatpush.bf16.msra.mxu2 %v2443_v39  ;;  %1447 = vmatpush.bf16.msra.mxu3 %v2445_v40 }
 0x312   : > { %2292 = vmatmul.msk.bf16.vlgmr.msrb.gmra.mxu0 %vm1161_vm11, %v1052_v32  ;;  %2301 = vmatmul.msk.bf16.vlgmr.msrb.gmra.mxu1 %vm1161_vm11, %v1052_v32 }
 0x313   : > { %2310 = vmatmul.msk.bf16.vlgmr.msrb.gmra.mxu2 %vm1161_vm11, %v1052_v32  ;;  %2319 = vmatmul.msk.bf16.vlgmr.msrb.gmra.mxu3 %vm1161_vm11, %v1052_v32 }
 0x322   : > { %2328 = vmatmul.msk.bf16.vlgmr.msra.gmra.mxu0 %vm1161_vm11, %v1052_v32  ;;  %2337 = vmatmul.msk.bf16.vlgmr.msra.gmra.mxu1 %vm1161_vm11, %v1052_v32 }
 0x323   : > { %2346 = vmatmul.msk.bf16.vlgmr.msra.gmra.mxu2 %vm1161_vm11, %v1052_v32  ;;  %2355 = vmatmul.msk.bf16.vlgmr.msra.gmra.mxu3 %vm1161_vm11, %v1052_v32 }
 0x37f   : > { %v1174_v41 = vpop.f32.mrf.mxu0  ;;  %v1199_v42 = vpop.f32.mrf.mxu1 }
 0x380   : > { %v1175_v1 = vadd.f32 %v2539_v56, %v1174_v41  ;;  %v1200_v2 = vadd.f32 %v2540_v57, %v1199_v42 }
 0x382   : > { %v1453_v13 = vpack.c.bf16 %v1175_v1, %v1175_v1  ;;  %v1454_v14 = vpack.c.bf16 %v1200_v2, %v1200_v2 }
 0x386   : > { %v1224_v43 = vpop.f32.mrf.mxu2  ;;  %v1249_v44 = vpop.f32.mrf.mxu3 }
 0x387   : > { %v1176_v45 = vpop.f32.mrf.mxu0  ;;  %v1201_v46 = vpop.f32.mrf.mxu1  ;;  %v1225_v19 = vadd.f32 %v2541_v9, %v1224_v43  ;;  %v1250_v20 = vadd.f32 %v2542_v10, %v1249_v44 }
 0x389   : > { %v1455_v29 = vpack.c.bf16 %v1225_v19, %v1225_v19  ;;  %v1456_v30 = vpack.c.bf16 %v1250_v20, %v1250_v20 }
 0x38e   : > { %v1226_v49 = vpop.f32.mrf.mxu2  ;;  %v1251_v50 = vpop.f32.mrf.mxu3 }
 0x38f   : > { %v1274_v52 = vpop.f32.mrf.mxu0  ;;  %v1299_v53 = vpop.f32.mrf.mxu1 }
 0x390   : > { %v1275_v54 = vadd.f32 %v2543_v47, %v1274_v52  ;;  %v1300_v55 = vadd.f32 %v2544_v48, %v1299_v53 }
 0x392   : > { %v1457_v58 = vpack.c.bf16 %v1275_v54, %v1275_v54  ;;  %v1458_v60 = vpack.c.bf16 %v1300_v55, %v1300_v55 }
 0x394   : > { %v1466_v63 = vsel %vm1461_vm12, %v1457_v58, 0  ;;  %v1485_v0 = vsel %vm1461_vm12, %v1458_v60, 0 }
 0x395   : > { %1475 = vmatpush.bf16.xpose.msrb.mxu0 %v1466_v63  ;;  %1494 = vmatpush.bf16.xpose.msrb.mxu1 %v1485_v0 }
 0x396   : > { %v1324_v3 = vpop.f32.mrf.mxu2  ;;  %v1349_v4 = vpop.f32.mrf.mxu3 }
 0x397   : > { %v1325_v5 = vadd.f32 %v2545_v61, %v1324_v3  ;;  %v1350_v6 = vadd.f32 %v2546_v62, %v1349_v4  ;;  %v1276_v7 = vpop.f32.mrf.mxu0  ;;  %v1301_v8 = vpop.f32.mrf.mxu1 }
 0x399   : > { %v1459_v11 = vpack.c.bf16 %v1325_v5, %v1325_v5  ;;  %v1460_v12 = vpack.c.bf16 %v1350_v6, %v1350_v6 }
 0x39b   : > { %v1504_v15 = vsel %vm1461_vm12, %v1459_v11, 0  ;;  %v1523_v16 = vsel %vm1461_vm12, %v1460_v12, 0 }
 0x39c   : > { %1513 = vmatpush.bf16.xpose.msrb.mxu2 %v1504_v15  ;;  %1532 = vmatpush.bf16.xpose.msrb.mxu3 %v1523_v16 }
 0x39d   : > { %2356 = vmatmul.msk.bf16.vlgmr.msrb.gmra.mxu0 %vm1461_vm12, %v1453_v13  ;;  %2357 = vmatmul.msk.bf16.vlgmr.msrb.gmra.mxu1 %vm1461_vm12, %v1454_v14 }
 0x39e   : > { %v1326_v21 = vpop.f32.mrf.mxu2  ;;  %v1351_v22 = vpop.f32.mrf.mxu3 }
 0x39f   : > { %v1374_v25 = vpop.f32.mrf.mxu0  ;;  %v1399_v26 = vpop.f32.mrf.mxu1 }
 0x3a0   : > { %v1375_v27 = vadd.f32 %v2547_v17, %v1374_v25  ;;  %v1400_v28 = vadd.f32 %v2548_v18, %v1399_v26 }
 0x3a2   : > { %v1587_v32 = vpack.c.bf16 %v1375_v27, %v1375_v27  ;;  %v1588_v33 = vpack.c.bf16 %v1400_v28, %v1400_v28 }
 0x3a3   : > { %2358 = vmatmul.msk.bf16.vlgmr.msrb.gmra.mxu2 %vm1461_vm12, %v1455_v29  ;;  %2359 = vmatmul.msk.bf16.vlgmr.msrb.gmra.mxu3 %vm1461_vm12, %v1456_v30 }
 0x3a4   : > { %v1600_v36 = vand.u32 %v1598_v31, %v1587_v32  ;;  %v1619_v37 = vand.u32 %v1598_v31, %v1588_v33 }
 0x3a6   : > { %v1424_v38 = vpop.f32.mrf.mxu2  ;;  %v1449_v39 = vpop.f32.mrf.mxu3  ;;  %1609 = vmatpush.bf16.msra.mxu0 %v1600_v36  ;;  %1628 = vmatpush.bf16.msra.mxu1 %v1619_v37  ;;  %v1676_v36 = vld [vmem:[%s2888_s21] sm:$0xf] }
 0x3a7   : > { %v1425_v40 = vadd.f32 %v2549_v34, %v1424_v38  ;;  %v1450_v41 = vadd.f32 %v2550_v35, %v1449_v39  ;;  %v1376_v42 = vpop.f32.mrf.mxu0  ;;  %v1401_v43 = vpop.f32.mrf.mxu1  ;;  %v1685_v37 = vsel %vm1683_vm1, %v1676_v36, 0  ;;  %v1678_v38 = vld [vmem:[%s2888_s21 + $0x8] sm:$0xf]  ;;  %v2451_v36 = vld [vmem:[%s2924_s19 + $0x10] sm:$0xff] }
 0x3a8   : > { %v1723_v39 = vsel %vm1683_vm1, %v1678_v38, 0  ;;  %v1679_v42 = vld [vmem:[%s2888_s21 + $0xc] sm:$0xf] }
 0x3a9   : > { %v1589_v44 = vpack.c.bf16 %v1425_v40, %v1425_v40  ;;  %v1590_v45 = vpack.c.bf16 %v1450_v41, %v1450_v41  ;;  %v1677_v40 = vld [vmem:[%s2888_s21 + $0x4] sm:$0xf]  ;;  %v1742_v43 = vsel %vm1683_vm1, %v1679_v42, 0  ;;  %v2450_v38 = vld [vmem:[%s2924_s19 + $0x8] sm:$0xff] }
 0x3aa   : > { %1694 = vmatpush.bf16.msrb.mxu0 %v1685_v37  ;;  %v1704_v41 = vsel %vm1683_vm1, %v1677_v40, 0  ;;  %v2554_v37 = vld [vmem:[%s3267_s2] ss:$0 sm:$0xff] }
 0x3ab   : > { %v1638_v46 = vand.u32 %v1598_v31, %v1589_v44  ;;  %v1657_v47 = vand.u32 %v1598_v31, %v1590_v45  ;;  %1713 = vmatpush.bf16.msrb.mxu1 %v1704_v41  ;;  %v2449_v41 = vld [vmem:[%s2924_s19] sm:$0xff] }
 0x3ad   : > { %1647 = vmatpush.bf16.msra.mxu2 %v1638_v46  ;;  %1666 = vmatpush.bf16.msra.mxu3 %v1657_v47 }
 0x3ae   : > { %v1426_v48 = vpop.f32.mrf.mxu2  ;;  %v1451_v49 = vpop.f32.mrf.mxu3 }
 0x3b1   : > { %1732 = vmatpush.bf16.msrb.mxu2 %v1723_v39  ;;  %1751 = vmatpush.bf16.msrb.mxu3 %v1742_v43 }
 0x41a   : > { %v1477_v50 = vpop.f32.mrf.mxu0  ;;  %v1496_v52 = vpop.f32.mrf.mxu1 }
 0x41b   : > { %v1539_v53 = vsel %vm1538_vm15, %v1477_v50, -inf  ;;  %v1542_v56 = vsel %vm1538_vm15, %v1496_v52, -inf }
 0x41c   : > { %1540 = vmax.xlane.f32.xlu2 %v1539_v53 }
 0x422   : > { %v1479_v54 = vpop.f32.mrf.mxu0  ;;  %v1498_v55 = vpop.f32.mrf.mxu1 }
 0x424   : > { %1543 = vmax.xlane.f32.xlu2 %v1542_v56 }
 0x426   : > { %v1515_v57 = vpop.f32.mrf.mxu2  ;;  %v1534_v58 = vpop.f32.mrf.mxu3 }
 0x427   : > { %v1545_v60 = vsel %vm1538_vm15, %v1515_v57, -inf  ;;  %v1548_v63 = vsel %vm1538_vm15, %v1534_v58, -inf }
 0x428   : > { %1546 = vmax.xlane.f32.xlu1 %v1545_v60 }
 0x42e   : > { %v1517_v61 = vpop.f32.mrf.mxu2  ;;  %v1536_v62 = vpop.f32.mrf.mxu3 }
 0x430   : > { %1549 = vmax.xlane.f32.xlu1 %v1548_v63 }
 0x48f   : > { %v1541_v0 = vpop.xlane.xlu2 %1540 }
 0x490   : > { %v1551_v1 = vsub.f32 %v1477_v50, %v1541_v0 }
 0x492   : > { %v1555_v2 = vmul.f32 1.442695, %v1551_v1 }
 0x494   : > { %2560 = vpow2.f32 %v1555_v2 }
 0x497   : > { %v1544_v4 = vpop.xlane.xlu2 %1543 }
 0x498   : > { %v1552_v8 = vsub.f32 %v1496_v52, %v1544_v4 }
 0x49a   : > { %v2561_v3 = vpop.eup %2560  ;;  %v1557_v10 = vmul.f32 1.442695, %v1552_v8  ;;  %v2551_v8 = vld [vmem:[%s3264_s27] ss:$0 sm:$0xff]  ;;  %s3270_s27 = sld [smem:[#allocation27_spill]] (!%p2395_p1) }
 0x49b   : > { %v1547_v5 = vpop.xlane.xlu1 %1546  ;;  %v1563_v6 = vsel %vm1538_vm15, %v2561_v3, 0.0 }
 0x49c   : > { %v1553_v7 = vsub.f32 %v1515_v57, %v1547_v5  ;;  %1564 = vadd.xlane.f32.xlu2 %v1563_v6 }
 0x49e   : > { %v1559_v9 = vmul.f32 1.442695, %v1553_v7 }
 0x4a0   : > { %2562 = vpow2.f32 %v1559_v9 }
 0x4a1   : > { %2564 = vpow2.f32 %v1557_v10 }
 0x4a3   : > { %v1550_v11 = vpop.xlane.xlu1 %1549 }
 0x4a4   : > { %v1554_v12 = vsub.f32 %v1534_v58, %v1550_v11 }
 0x4a6   : > { %v2563_v13 = vpop.eup %2562  ;;  %v1561_v14 = vmul.f32 1.442695, %v1554_v12 }
 0x4a7   : > { %v1569_v15 = vsel %vm1538_vm15, %v2563_v13, 0.0  ;;  %v2565_v16 = vpop.eup %2564 }
 0x4a8   : > { %2566 = vpow2.f32 %v1561_v14  ;;  %1570 = vadd.xlane.f32.xlu0 %v1569_v15  ;;  %v1566_v19 = vsel %vm1538_vm15, %v2565_v16, 0.0 }
 0x4ae   : > { %v2567_v17 = vpop.eup %2566 }
 0x4af   : > { %v1572_v18 = vsel %vm1538_vm15, %v2567_v17, 0.0 }
 0x4b0   : > { %1573 = vadd.xlane.f32.xlu1 %v1572_v18  ;;  %1567 = vadd.xlane.f32.xlu0 %v1566_v19  ;;  %v2448_v18 = vld [vmem:[%s2910_s9 + $0x8] sm:$0xff] }
 0x50f   : > { %v1565_v20 = vpop.xlane.xlu2 %1564 }
 0x510   : > { %2568 = vrcp.f32 %v1565_v20 }
 0x516   : > { %v2569_v21 = vpop.eup %2568 }
 0x517   : > { %v1579_v22 = vmul.f32 %v2569_v21, %v2561_v3 }
 0x519   : > { %v1583_v23 = vpack.c.bf16 %v1579_v22, %v1579_v22 }
 0x51b   : > { %v1571_v24 = vpop.xlane.xlu0 %1570  ;;  %2360 = vmatmul.msk.bf16.vlgmr.msra.gmra.mxu0 %vm1591_vm0, %v1583_v23 }
 0x51c   : > { %2570 = vrcp.f32 %v1571_v24  ;;  %1832 = vmatpush.bf16.msra.mxu0 %v2448_v18 }
 0x522   : > { %v2571_v25 = vpop.eup %2570 }
 0x523   : > { %v1581_v26 = vmul.f32 %v2571_v25, %v2563_v13  ;;  %v1574_v27 = vpop.xlane.xlu1 %1573  ;;  %v1568_v28 = vpop.xlane.xlu0 %1567 }
 0x524   : > { %2572 = vrcp.f32 %v1574_v27 }
 0x525   : > { %v1585_v29 = vpack.c.bf16 %v1581_v26, %v1581_v26  ;;  %2574 = vrcp.f32 %v1568_v28  ;;  %v2552_v28 = vld [vmem:[%s3265_s23] ss:$0 sm:$0xff]  ;;  %s3271_s23 = sld [smem:[#allocation28_spill]] (!%p2395_p1) }
 0x527   : > { %2362 = vmatmul.msk.bf16.vlgmr.msra.gmra.mxu2 %vm1591_vm0, %v1585_v29 }
 0x52a   : > { %v2573_v30 = vpop.eup %2572 }
 0x52b   : > { %v2575_v31 = vpop.eup %2574  ;;  %v1582_v32 = vmul.f32 %v2573_v30, %v2567_v17 }
 0x52c   : > { %v1580_v33 = vmul.f32 %v2575_v31, %v2565_v16  ;;  %v2553_v31 = vld [vmem:[%s3266_s8] ss:$0 sm:$0xff] }
 0x52d   : > { %v1586_v34 = vpack.c.bf16 %v1582_v32, %v1582_v32 }
 0x52e   : > { %v1584_v35 = vpack.c.bf16 %v1580_v33, %v1580_v33 }
 0x52f   : > { %2363 = vmatmul.msk.bf16.vlgmr.msra.gmra.mxu3 %vm1591_vm0, %v1586_v34 }
 0x530   : > { %2361 = vmatmul.msk.bf16.vlgmr.msra.gmra.mxu1 %vm1591_vm0, %v1584_v35  ;;  %v2452_v35 = vld [vmem:[%s2924_s19 + $0x18] sm:$0xff] }
 0x531   : > { %1905 = vmatpush.bf16.msra.mxu1 %v2452_v35 }
 0x535   : > { %1906 = vmatpush.bf16.msra.mxu1 %v2451_v36 }
 0x539   : > { %1907 = vmatpush.bf16.msra.mxu1 %v2450_v38 }
 0x53d   : > { %1908 = vmatpush.bf16.msra.mxu1 %v2449_v41 }
 0x598   : > { %v1611_v44 = vpop.f32.mrf.mxu0 }
 0x599   : > { %v1672_v45 = vpack.c.bf16 %v1611_v44, %v1611_v44 }
 0x59b   : > { %2364 = vmatmul.msk.bf16.vlgmr.msrb.gmra.mxu0 %vm1461_vm12, %v1672_v45 }
 0x5a0   : > { %v1613_v46 = vpop.f32.mrf.mxu0 }
 0x5aa   : > { %v1649_v47 = vpop.f32.mrf.mxu2 }
 0x5ab   : > { %v1674_v48 = vpack.c.bf16 %v1649_v47, %v1649_v47 }
 0x5ad   : > { %v1630_v49 = vpop.f32.mrf.mxu1  ;;  %2366 = vmatmul.msk.bf16.vlgmr.msrb.gmra.mxu2 %vm1461_vm12, %v1674_v48 }
 0x5ae   : > { %v1673_v50 = vpack.c.bf16 %v1630_v49, %v1630_v49 }
 0x5b0   : > { %2365 = vmatmul.msk.bf16.vlgmr.msrb.gmra.mxu1 %vm1461_vm12, %v1673_v50 }
 0x5b2   : > { %v1651_v52 = vpop.f32.mrf.mxu2  ;;  %v1668_v53 = vpop.f32.mrf.mxu3 }
 0x5b3   : > { %v1675_v54 = vpack.c.bf16 %v1668_v53, %v1668_v53 }
 0x5b5   : > { %v1632_v55 = vpop.f32.mrf.mxu1  ;;  %2367 = vmatmul.msk.bf16.vlgmr.msrb.gmra.mxu3 %vm1461_vm12, %v1675_v54 }
 0x5ba   : > { %v1670_v56 = vpop.f32.mrf.mxu3 }
 0x618   : > { %v1696_v57 = vpop.f32.mrf.mxu0 }
 0x619   : > { %v1757_v63 = vsel %vm1014_vm6, %v1696_v57, 0.0 }
 0x620   : > { %v1698_v58 = vpop.f32.mrf.mxu0 }
 0x62d   : > { %v1715_v60 = vpop.f32.mrf.mxu1 }
 0x62e   : > { %v1758_v62 = vsel %vm1014_vm6, %v1715_v60, 0.0 }
 0x62f   : > { %v1759_v2 = vadd.f32 %v1758_v62, %v1757_v63 }
 0x630   : > { %v1734_v61 = vpop.f32.mrf.mxu2 }
 0x631   : > { %v1760_v0 = vsel %vm1014_vm6, %v1734_v61, 0.0  ;;  %v2555_v61 = vld [vmem:[%s833_s20] ss:$0 sm:$0xff] }
 0x632   : > { %v1761_v3 = vadd.f32 %v1760_v0, %v1759_v2 }
 0x635   : > { %v1717_v1 = vpop.f32.mrf.mxu1 }
 0x638   : > { %v1736_v4 = vpop.f32.mrf.mxu2  ;;  %v1753_v5 = vpop.f32.mrf.mxu3 }
 0x639   : > { %v1762_v6 = vsel %vm1014_vm6, %v1753_v5, 0.0 }
 0x63a   : > { %v1763_v7 = vadd.f32 %v1762_v6, %v1761_v3 }
 0x63c   : > { %v1764_v9 = vadd.f32 %v1763_v7, %v2981_v51  ;;  %v2447_v51 = vld [vmem:[%s2910_s9] sm:$0xff] }
 0x63d   : > { %1833 = vmatpush.bf16.msra.mxu0 %v2447_v51 }
 0x63e   : > { %v3087_v10 = vadd.f32 %v2551_v8, %v1764_v9 }
 0x640   : > { %v1755_v11 = vpop.f32.mrf.mxu3  ;;  %v1772_v12 = vsel %vm1014_vm6, %v3087_v10, 0.0 }
 0x641   : > { %1773 = vadd.xlane.f32.xlu1 %v1772_v12 }
 0x6b4   : > { %v1774_v13 = vpop.xlane.xlu1 %1773 }
 0x6b5   : > { %v1775_v14 = vmul.f32 %v1774_v13, %v2985_v59 }
 0x6b7   : > { %v1776_v15 = vsub.f32 %v3087_v10, %v1775_v14 }
 0x6b9   : > { %v1777_v16 = vmul.f32 %v1776_v15, %v1776_v15 }
 0x6bb   : > { %v1778_v17 = vsel %vm1014_vm6, %v1777_v16, 0.0 }
 0x6bc   : > { %1779 = vadd.xlane.f32.xlu2 %v1778_v17 }
 0x72f   : > { %v1780_v19 = vpop.xlane.xlu2 %1779 }
 0x730   : > { %v1781_v20 = vmul.f32 %v1780_v19, %v2985_v59 }
 0x732   : > { %v1782_v21 = vadd.f32 1e-05, %v1781_v20 }
 0x734   : > { %2576 = vrsqrt.f32 %v1782_v21  ;;  %vm1789_vm3 = vweird.f32 %v1782_v21 }
 0x73a   : > { %v2577_v22 = vpop.eup %2576 }
 0x73b   : > { %v1784_v23 = vmul.f32 %v2577_v22, %v1782_v21  ;;  %vm1790_vm2 = vweird.f32 %v2577_v22 }
 0x73c   : > { %vm1791_vm4 = vmor %vm1789_vm3, %vm1790_vm2 }
 0x73d   : > { %v1785_v24 = vmul.f32 %v2577_v22, %v1784_v23 }
 0x73f   : > { %v1786_v25 = vmul.f32 0.5, %v1785_v24 }
 0x741   : > { %v1787_v26 = vsub.f32 1.5, %v1786_v25 }
 0x743   : > { %v1788_v27 = vmul.f32 %v2577_v22, %v1787_v26 }
 0x745   : > { %v1792_v29 = vsel %vm1791_vm4, %v2577_v22, %v1788_v27 }
 0x746   : > { %v1793_v30 = vmul.f32 %v1792_v29, %v1776_v15 }
 0x748   : > { %v1797_v32 = vmul.f32 %v2552_v28, %v1793_v30 }
 0x74a   : > { %v1801_v33 = vadd.f32 %v2553_v31, %v1797_v32 }
 0x74c   : > { %v1802_v34 = vpack.c.bf16 %v1801_v33, %v1801_v33 }
 0x74e   : > { %2376 = vmatmul.msk.bf16.vlgmr.msra.gmra.mxu0 %vm1161_vm11, %v1802_v34 }
 0x7cb   : > { %v1835_v39 = vpop.f32.mrf.mxu0 }
 0x7cc   : > { %v1836_v40 = vadd.f32 %v2554_v37, %v1835_v39 }
 0x7ce   : > { %v2377_v42 = vmul.f32 -1.702, %v1836_v40 }
 0x7d0   : > { %v1841_v43 = vmul.f32 1.442695, %v2377_v42 }
 0x7d2   : > { %2578 = vpow2.f32 %v1841_v43 }
 0x7d3   : > { %v1837_v44 = vpop.f32.mrf.mxu0 }
 0x7d8   : > { %v2579_v45 = vpop.eup %2578 }
 0x7d9   : > { %v1843_v46 = vadd.f32 1.0, %v2579_v45 }
 0x7db   : > { %2580 = vrcp.f32 %v1843_v46  ;;  %v1855_v50 = vand.u32 2147483648, %v1843_v46  ;;  %v1853_v53 = vand.u32 2147483647, %v1843_v46  ;;  %vm1849_vm7 = vweird.f32 %v1843_v46 }
 0x7dd   : > { %v1856_v55 = vor.u32 1.1754944e-38, %v1855_v50  ;;  %vm1854_vm9 = vcmp.eq.f32.partialorder %v1853_v53, 8.507059e+37 }
 0x7e1   : > { %v2581_v47 = vpop.eup %2580 }
 0x7e2   : > { %v1845_v48 = vmul.f32 %v2581_v47, %v1843_v46  ;;  %vm1850_vm5 = vweird.f32 %v2581_v47 }
 0x7e3   : > { %vm1851_vm8 = vmor %vm1849_vm7, %vm1850_vm5 }
 0x7e4   : > { %v1846_v49 = vsub.f32 1.0, %v1845_v48 }
 0x7e6   : > { %v1847_v52 = vmul.f32 %v2581_v47, %v1846_v49 }
 0x7e8   : > { %v1848_v54 = vadd.f32 %v2581_v47, %v1847_v52 }
 0x7ea   : > { %v1852_v56 = vsel %vm1851_vm8, %v2581_v47, %v1848_v54 }
 0x7eb   : > { %v1857_v57 = vsel %vm1854_vm9, %v1856_v55, %v1852_v56 }
 0x7ec   : > { %v1859_v58 = vmul.f32 %v1857_v57, %v1836_v40 }
 0x7ee   : > { %v1860_v60 = vpack.c.bf16 %v1859_v58, %v1859_v58 }
 0x7f0   : > { %2394 = vmatmul.msk.bf16.vlgmr.msra.gmra.mxu1 %vm1897_vm10, %v1860_v60 }
 0x86d   : > { %v1910_v62 = vpop.f32.mrf.mxu1 }
 0x86e   : > { %v1911_v63 = vadd.f32 %v2555_v61, %v1910_v62 }
 0x870   : > { %v1914_v0 = vadd.f32 %v1911_v63, %v3087_v10 }
 0x871   : > { %1919 = sbr.rel (%p2395_p1) target bundleno = 2571 (0xa0b), region = 108 }
 0x872   : > { %1915 = vst.msk [vmem:[#allocation2] sm:$0x1f] %vm1014_vm6, %v1914_v0 }
 0x875   : > { %v1912_v1 = vpop.f32.mrf.mxu1 }
 0x876   : > { %vm1922_vm12 = vcmask 253952   ;;  %v2454_v8 = vld [vmem:[%s3269_s7 + $0x8] sm:$0xff]  ;;  %v2453_v9 = vld [vmem:[%s3269_s7] sm:$0xff]  ;;  %vm1980_vm15 = vcmask 122880  }
 0x877   : > { %v1923_v2 = vsel %vm1922_vm12, %v1914_v0, 0.0  ;;  %1973 = vmatpush.bf16.msra.mxu0 %v2454_v8  ;;  %v1920_v51 = vld [vmem:[%s3270_s27] sm:$0x1] }
 0x878   : > { %1924 = vadd.xlane.f32.xlu0 %v1923_v2 }
 0x87b   : > { %1974 = vmatpush.bf16.msra.mxu0 %v2453_v9 }
 0x8eb   : > { %v1925_v3 = vpop.xlane.xlu0 %1924 }
 0x8ec   : > { %v1926_v4 = vmul.f32 %v1925_v3, %v2985_v59 }
 0x8ee   : > { %v1927_v5 = vsub.f32 %v1914_v0, %v1926_v4 }
 0x8f0   : > { %v1928_v6 = vmul.f32 %v1927_v5, %v1927_v5 }
 0x8f2   : > { %v1929_v7 = vsel %vm1922_vm12, %v1928_v6, 0.0 }
 0x8f3   : > { %1930 = vadd.xlane.f32.xlu0 %v1929_v7 }
 0x966   : > { %v1931_v10 = vpop.xlane.xlu0 %1930 }
 0x967   : > { %v1932_v11 = vmul.f32 %v1931_v10, %v2985_v59  ;;  %v1921_v59 = vld [vmem:[%s3271_s23] sm:$0x1] }
 0x969   : > { %v1933_v12 = vadd.f32 1e-05, %v1932_v11 }
 0x96b   : > { %2582 = vrsqrt.f32 %v1933_v12  ;;  %vm1940_vm13 = vweird.f32 %v1933_v12 }
 0x971   : > { %v2583_v13 = vpop.eup %2582 }
 0x972   : > { %v1935_v14 = vmul.f32 %v2583_v13, %v1933_v12  ;;  %vm1941_vm6 = vweird.f32 %v2583_v13 }
 0x973   : > { %vm1942_vm14 = vmor %vm1940_vm13, %vm1941_vm6 }
 0x974   : > { %v1936_v15 = vmul.f32 %v2583_v13, %v1935_v14 }
 0x976   : > { %v1937_v16 = vmul.f32 0.5, %v1936_v15 }
 0x978   : > { %v1938_v17 = vsub.f32 1.5, %v1937_v16 }
 0x97a   : > { %v1939_v18 = vmul.f32 %v2583_v13, %v1938_v17 }
 0x97c   : > { %v1943_v19 = vsel %vm1942_vm14, %v2583_v13, %v1939_v18 }
 0x97d   : > { %v1944_v20 = vmul.f32 %v1943_v19, %v1927_v5 }
 0x97f   : > { %v1945_v21 = vmul.f32 %v1944_v20, %v1920_v51 }
 0x981   : > { %v1946_v22 = vadd.f32 %v1945_v21, %v1921_v59 }
 0x983   : > { %v1947_v23 = vpack.c.bf16 %v1946_v22, %v1946_v22 }
 0x985   : > { %2404 = vmatmul.msk.bf16.vlgmr.msra.gmra.mxu0 %vm1161_vm11, %v1947_v23 }
 0xa02   : > { %v1976_v24 = vpop.f32.mrf.mxu0 }
 0xa03   : > { %1981 = vst.msk [vmem:[%s2928_s25] sm:$0x1] %vm1980_vm15, %v1976_v24 }
 0xa0a   : > { %v1978_v25 = vpop.f32.mrf.mxu0 }
 0xa0b PF: > { %s3272_s26 = sld [smem:[#allocation9_spill]]  ;;  %s1993_s19 = sshll.u32 %s2928_s25, 4  ;;  %s1994_s19 = int_to_ptr.vmem [resolvable:$true] %s1993_s19 }
 0xa0c   : > { %s3273_s6 = sld [smem:[#allocation30_spill]]  ;;  %s3275_s17 = sand.u32 1, %s2654_s22  }
 0xa0d   : > { %s1983_s20 = scalar_lea.sflag [#allocation4], %s3275_s17 }
 0xa12   : > { %s1991_s2 = scalar_lea.hbm %s3273_s6, %s3272_s26  ;;  %s2604_s21 = scalar_lea.hbm %s3273_s6, 2 }
 0xa13   : > { %s1995_s29 = sshll.u32 %s1991_s2, 4  ;;  %s1996_s29 = int_to_ptr.hbm [resolvable:$true] %s1995_s29 }
 0xa14   : > { %s2598_s1 = sshra.s32 %s1996_s29, 4  ;;  %s2599_s1 = int_to_ptr.hbm [resolvable:$true] %s2598_s1 }
 0xa15   : > { %s2600_s4 = scalar_lea.hbm %s2599_s1, 1  ;;  %p2605_p6 = scmp.lt.s32.totalorder %s2599_s1, %s3273_s6 }
 0xa16   : > { %p2601_p2 = scmp.ne.s32.totalorder %s2599_s1, %s2600_s4  ;;  %p2606_p7 = scmp.lt.s32.totalorder %s2604_s21, %s2600_s4 }
 0xa18   : > { %p2602_p4 = pnand %p2601_p2, %p2837_p3  ;;  %p2607_p8 = por %p2606_p7, %p2605_p6 }
 0xa1a   : > { %p2603_p5 = pneg %p2602_p4 }
 0xa1c   : > { %p2608_p10 = pnand %p2607_p8, %p2603_p5 }
 0xa1e   : > { %2611 = shalt.err (!%p2608_p10)
}
 0xa1f   : > { %2457 = dma.vmem_to_hbm [thread:$0]  (%p2837_p3), %s1994_s19, 16, %s1996_s29, %s1983_s20  }
 0xa20 PF: > { %s3276_s25 = sld [smem:[#allocation12_spill]] }
 0xa21   : > { %s3277_s28 = sld [smem:[#allocation6_spill]] }
 0xa26   : > { %p2463_p11 = scmp.ge.s32.totalorder %s3276_s25, 2 }
 0xa27   : > { %s2007_s26 = sand.u32 1, %s3277_s28  }
 0xa28   : > { %p2460_p12 = pnand %p2463_p11, %p2847_p9  ;;  %s2008_s30 = scalar_lea.sflag [#allocation4], %s2007_s26 }
 0xa2a   : > { %p2461_p13 = pneg %p2460_p12 }
 0xa2c   : > { %2645 = dma.done.wait (%p2461_p13), %s2008_s30, 16  }
 0xa2d   : > { %2647 = vsyncadd (%p2461_p13), %s2008_s30, 4294967280  ;;  %s33_s26 = sadd.s32 1, %s3276_s25   ;;  %s3279_s8 = sld [smem:[#allocation7_spill]] }
 0xa2e   : > { %p30_p0 = scmp.ge.s32.totalorder %s33_s26, 6   ;;  %s3280_s23 = sld [smem:[#allocation17_spill]] }
 0xa2f   : > { %s3281_s24 = sld [smem:[#allocation10_spill]]  ;;  %s3285_s1 = smov %s2654_s22 }
 0xa30   : > { %s3282_s2 = sld [smem:[#allocation11_spill]]  ;;  %32 = sbr.rel (!%p30_p0) target bundleno = 19 (0x13), region = 179 }
 0xa31   : > { %s3283_s25 = sld [smem:[#allocation13_spill]] }
 0xa32   : > { %s3284_s3 = sld [smem:[#allocation15_spill]] }
 0xa33   : > { %s3286_s22 = smov %s3279_s8 }
 0xa35   :  { %2013 = vsyncpa [#allocation4], 1 }
 0xa36   :  { %2015 = vsyncpa [#allocation4 + $0x1], 1 }

</bundles_post_ra>
